<compile_context>
chip_gen: v6e
topology: v6e:2x2x1
jax: 0.10.0
libtpu: 0.0.40
codegen_flags: <defaults>
</compile_context>

<pallas_src>
import jax
import jax.numpy as jnp
from jax.experimental import pallas as pl
from jax.experimental.pallas import tpu as pltpu

MODEL_DIM = 32
NUM_HEADS = 4
HEAD_DIM = MODEL_DIM // NUM_HEADS
DROPOUT_P = 0.1          # dropout_probability from __init__
LN_EPS = 1e-5            # torch.nn.LayerNorm default eps

_KEEP_SCALE = 1.0 / (1.0 - DROPOUT_P)
# keep element iff hash >= threshold; hash ~ uniform over int32 range.
_DROP_THRESHOLD = int(round(DROPOUT_P * (1 << 32))) - (1 << 31)   # -1717986918


def _layernorm(x, gamma, beta):
    # x: (N, D) f32, gamma/beta: (1, D) f32 — biased variance like nn.LayerNorm
    mean = jnp.mean(x, axis=-1, keepdims=True)
    var = jnp.mean((x - mean) ** 2, axis=-1, keepdims=True)
    inv = jax.lax.rsqrt(var + LN_EPS)
    return (x - mean) * inv * gamma + beta


def _srl(x, k):
    # logical right shift for int32 (arith shift, then mask sign-extended bits)
    return (x >> k) & ((1 << (32 - k)) - 1)


def _hash_bits_i32(shape, seed):
    """Stateless counter-based hash -> ~uniform int32 bits.

    Only int32 iota / shift / xor / add / and ops, so it lowers on Mosaic and
    also runs under CPU interpret mode (unlike pltpu.prng_*)."""
    r = jax.lax.broadcasted_iota(jnp.int32, shape, 0)
    c = jax.lax.broadcasted_iota(jnp.int32, shape, 1)
    x = (r << 16) + c + seed                  # unique counter per element
    # two xorshift-style avalanche rounds
    x = x ^ (x << 13)
    x = x ^ _srl(x, 17)
    x = x ^ (x << 5)
    x = x + jnp.int32(-1640531527)            # += 0x9E3779B9 (golden ratio)
    x = x ^ (x << 9)
    x = x ^ _srl(x, 11)
    x = x ^ (x << 7)
    return x


def sublayer_logic(srb1, srb2, gamma, beta, wq, wk, wv, wo, seed):
    B, S, D = srb1.shape
    assert D % NUM_HEADS == 0
    head_dim = D // NUM_HEADS
    scale = 1.0 / (head_dim ** 0.5)

    # Flatten batch+seq onto the sublane axis in the wrapper (free in XLA) so
    # the kernel sees a single rectangular (B*S, D) slab and runs once.
    x1f = srb1.reshape(B * S, D)
    x2f = srb2.reshape(B * S, D)
    seed2d = jnp.asarray(seed, dtype=jnp.int32).reshape(1, 1)

    def kernel(x1_ref, x2_ref, g_ref, bta_ref,
               wq_ref, wk_ref, wv_ref, wo_ref, seed_ref, out_ref):
        x1 = x1_ref[...].astype(jnp.float32)          # (B*S, D)
        x2 = x2_ref[...].astype(jnp.float32)
        gamma = g_ref[...].astype(jnp.float32)        # (1, D)
        beta = bta_ref[...].astype(jnp.float32)
        wq_m = wq_ref[...]
        wk_m = wk_ref[...]
        wv_m = wv_ref[...]
        wo_m = wo_ref[...]

        # --- self.norm applied to both residual branches (shared params) ----
        n1 = _layernorm(x1, gamma, beta)
        n2 = _layernorm(x2, gamma, beta)

        # --- mha(norm(srb1), norm(srb2)): multi-head cross attention ---------
        # Projections for both batches in a single matmul; scale folded into q.
        q = jnp.dot(n1, wq_m, preferred_element_type=jnp.float32) * scale
        k = jnp.dot(n2, wk_m, preferred_element_type=jnp.float32)
        v = jnp.dot(n2, wv_m, preferred_element_type=jnp.float32)

        per_batch = []
        for bidx in range(B):                           # static unrolled, B small
            rows = slice(bidx * S, (bidx + 1) * S)
            qb, kb, vb = q[rows, :], k[rows, :], v[rows, :]      # (S, D)
            acc = jnp.zeros((S, D), jnp.float32)
            for h in range(NUM_HEADS):                  # static unrolled heads
                cols = slice(h * head_dim, (h + 1) * head_dim)
                qh, kh, vh = qb[:, cols], kb[:, cols], vb[:, cols]   # (S, hd)
                # contract on the last dims -> no explicit kh.T
                scores = jax.lax.dot_general(
                    qh, kh, (((1,), (1,)), ((), ())),
                    preferred_element_type=jnp.float32)              # (S, S)
                scores = scores - jnp.max(scores, axis=-1, keepdims=True)
                p = jnp.exp(scores)
                p = p * pl.reciprocal(jnp.sum(p, axis=-1, keepdims=True),
                                      approx=True)
                head_out = jnp.dot(p, vh, preferred_element_type=jnp.float32)
                # fold the head-concat into the output projection
                acc = acc + jnp.dot(head_out, wo_m[cols, :],
                                    preferred_element_type=jnp.float32)
            per_batch.append(acc)
        mha_out = jnp.concatenate(per_batch, axis=0)                 # (B*S, D)

        # --- self.dropout (training mode, inverted scaling) ------------------
        seed_b = seed_ref[...]                                       # (1, 1) i32
        bits = _hash_bits_i32(mha_out.shape, seed_b)
        keep = bits >= jnp.int32(_DROP_THRESHOLD)
        dropped = jnp.where(keep, mha_out * _KEEP_SCALE, 0.0)

        # --- residual ---------------------------------------------------------
        out_ref[...] = (x1 + dropped).astype(out_ref.dtype)

    vmem_spec = pl.BlockSpec(memory_space=pltpu.MemorySpace.VMEM)
    out_flat = pl.pallas_call(
        kernel,
        out_shape=jax.ShapeDtypeStruct((B * S, D), srb1.dtype),
        in_specs=[vmem_spec] * 9,
        out_specs=vmem_spec,
    )(x1f, x2f, gamma, beta, wq, wk, wv, wo, seed2d)

    return out_flat.reshape(B, S, D)


if __name__ == "__main__":
    B, S, D = 2, 8, MODEL_DIM

    key = jax.random.PRNGKey(0)
    k1, k2, kq, kk, kv, ko = jax.random.split(key, 6)

    srb1 = jax.random.normal(k1, (B, S, D), dtype=jnp.float32)
    srb2 = jax.random.normal(k2, (B, S, D), dtype=jnp.float32)

    # Deterministic parameter init (synthetic; shapes from the module / mha).
    gamma = jnp.ones((1, D), dtype=jnp.float32)       # LayerNorm weight
    beta = jnp.zeros((1, D), dtype=jnp.float32)       # LayerNorm bias
    wscale = 1.0 / jnp.sqrt(jnp.float32(D))
    wq = jax.random.normal(kq, (D, D), dtype=jnp.float32) * wscale
    wk = jax.random.normal(kk, (D, D), dtype=jnp.float32) * wscale
    wv = jax.random.normal(kv, (D, D), dtype=jnp.float32) * wscale
    wo = jax.random.normal(ko, (D, D), dtype=jnp.float32) * wscale

    seed = jnp.int32(1234)   # vary per training step for fresh dropout masks

    out = sublayer_logic(srb1, srb2, gamma, beta, wq, wk, wv, wo, seed)
    jax.block_until_ready(out)
    assert out.shape == (B, S, D) and out.dtype == jnp.float32
    assert bool(jnp.all(jnp.isfinite(out)))
    print("KERNEL_OK")
</pallas_src>

<mosaic_0001>
module attributes {stable_mosaic.version = 11 : i64} {
  func.func @kernel(%arg0: memref<16x32xf32, #tpu.memory_space<vmem>>, %arg1: memref<16x32xf32, #tpu.memory_space<vmem>>, %arg2: memref<1x32xf32, #tpu.memory_space<vmem>>, %arg3: memref<1x32xf32, #tpu.memory_space<vmem>>, %arg4: memref<32x32xf32, #tpu.memory_space<vmem>>, %arg5: memref<32x32xf32, #tpu.memory_space<vmem>>, %arg6: memref<32x32xf32, #tpu.memory_space<vmem>>, %arg7: memref<32x32xf32, #tpu.memory_space<vmem>>, %arg8: memref<1x1xi32, #tpu.memory_space<vmem>>, %arg9: memref<16x32xf32, #tpu.memory_space<vmem>>) attributes {dimension_semantics = [], scalar_prefetch = 0 : i64, scratch_operands = 0 : i64, tpu.core_type = #tpu.core_type<tc>} {
    %c0 = arith.constant 0 : index
    %c0_0 = arith.constant 0 : index
    %0 = vector.load %arg0[%c0, %c0_0] : memref<16x32xf32, #tpu.memory_space<vmem>>, vector<16x32xf32>
    %c0_1 = arith.constant 0 : index
    %c0_2 = arith.constant 0 : index
    %1 = vector.load %arg1[%c0_1, %c0_2] : memref<16x32xf32, #tpu.memory_space<vmem>>, vector<16x32xf32>
    %c0_3 = arith.constant 0 : index
    %c0_4 = arith.constant 0 : index
    %2 = vector.load %arg2[%c0_3, %c0_4] : memref<1x32xf32, #tpu.memory_space<vmem>>, vector<1x32xf32>
    %c0_5 = arith.constant 0 : index
    %c0_6 = arith.constant 0 : index
    %3 = vector.load %arg3[%c0_5, %c0_6] : memref<1x32xf32, #tpu.memory_space<vmem>>, vector<1x32xf32>
    %c0_7 = arith.constant 0 : index
    %c0_8 = arith.constant 0 : index
    %4 = vector.load %arg4[%c0_7, %c0_8] : memref<32x32xf32, #tpu.memory_space<vmem>>, vector<32x32xf32>
    %c0_9 = arith.constant 0 : index
    %c0_10 = arith.constant 0 : index
    %5 = vector.load %arg5[%c0_9, %c0_10] : memref<32x32xf32, #tpu.memory_space<vmem>>, vector<32x32xf32>
    %c0_11 = arith.constant 0 : index
    %c0_12 = arith.constant 0 : index
    %6 = vector.load %arg6[%c0_11, %c0_12] : memref<32x32xf32, #tpu.memory_space<vmem>>, vector<32x32xf32>
    %c0_13 = arith.constant 0 : index
    %c0_14 = arith.constant 0 : index
    %7 = vector.load %arg7[%c0_13, %c0_14] : memref<32x32xf32, #tpu.memory_space<vmem>>, vector<32x32xf32>
    %cst = arith.constant dense<0.000000e+00> : vector<16xf32>
    %8 = vector.multi_reduction <add>, %0, %cst [1] : vector<16x32xf32> to vector<16xf32>
    %9 = vector.shape_cast %8 : vector<16xf32> to vector<16x1xf32>
    %cst_15 = arith.constant 3.200000e+01 : f32
    %10 = vector.broadcast %cst_15 : f32 to vector<16x1xf32>
    %11 = arith.divf %9, %10 : vector<16x1xf32>
    %12 = vector.broadcast %11 : vector<16x1xf32> to vector<16x32xf32>
    %13 = arith.subf %0, %12 : vector<16x32xf32>
    %14 = arith.mulf %13, %13 : vector<16x32xf32>
    %cst_16 = arith.constant dense<0.000000e+00> : vector<16xf32>
    %15 = vector.multi_reduction <add>, %14, %cst_16 [1] : vector<16x32xf32> to vector<16xf32>
    %16 = vector.shape_cast %15 : vector<16xf32> to vector<16x1xf32>
    %cst_17 = arith.constant 3.200000e+01 : f32
    %17 = vector.broadcast %cst_17 : f32 to vector<16x1xf32>
    %18 = arith.divf %16, %17 : vector<16x1xf32>
    %cst_18 = arith.constant 9.99999974E-6 : f32
    %19 = vector.broadcast %cst_18 : f32 to vector<16x1xf32>
    %20 = arith.addf %18, %19 : vector<16x1xf32>
    %21 = math.rsqrt %20 : vector<16x1xf32>
    %22 = vector.broadcast %11 : vector<16x1xf32> to vector<16x32xf32>
    %23 = arith.subf %0, %22 : vector<16x32xf32>
    %24 = vector.broadcast %21 : vector<16x1xf32> to vector<16x32xf32>
    %25 = arith.mulf %23, %24 : vector<16x32xf32>
    %26 = vector.broadcast %2 : vector<1x32xf32> to vector<16x32xf32>
    %27 = arith.mulf %25, %26 : vector<16x32xf32>
    %28 = vector.broadcast %3 : vector<1x32xf32> to vector<16x32xf32>
    %29 = arith.addf %27, %28 : vector<16x32xf32>
    %cst_19 = arith.constant dense<0.000000e+00> : vector<16xf32>
    %30 = vector.multi_reduction <add>, %1, %cst_19 [1] : vector<16x32xf32> to vector<16xf32>
    %31 = vector.shape_cast %30 : vector<16xf32> to vector<16x1xf32>
    %cst_20 = arith.constant 3.200000e+01 : f32
    %32 = vector.broadcast %cst_20 : f32 to vector<16x1xf32>
    %33 = arith.divf %31, %32 : vector<16x1xf32>
    %34 = vector.broadcast %33 : vector<16x1xf32> to vector<16x32xf32>
    %35 = arith.subf %1, %34 : vector<16x32xf32>
    %36 = arith.mulf %35, %35 : vector<16x32xf32>
    %cst_21 = arith.constant dense<0.000000e+00> : vector<16xf32>
    %37 = vector.multi_reduction <add>, %36, %cst_21 [1] : vector<16x32xf32> to vector<16xf32>
    %38 = vector.shape_cast %37 : vector<16xf32> to vector<16x1xf32>
    %cst_22 = arith.constant 3.200000e+01 : f32
    %39 = vector.broadcast %cst_22 : f32 to vector<16x1xf32>
    %40 = arith.divf %38, %39 : vector<16x1xf32>
    %cst_23 = arith.constant 9.99999974E-6 : f32
    %41 = vector.broadcast %cst_23 : f32 to vector<16x1xf32>
    %42 = arith.addf %40, %41 : vector<16x1xf32>
    %43 = math.rsqrt %42 : vector<16x1xf32>
    %44 = vector.broadcast %33 : vector<16x1xf32> to vector<16x32xf32>
    %45 = arith.subf %1, %44 : vector<16x32xf32>
    %46 = vector.broadcast %43 : vector<16x1xf32> to vector<16x32xf32>
    %47 = arith.mulf %45, %46 : vector<16x32xf32>
    %48 = vector.broadcast %2 : vector<1x32xf32> to vector<16x32xf32>
    %49 = arith.mulf %47, %48 : vector<16x32xf32>
    %50 = vector.broadcast %3 : vector<1x32xf32> to vector<16x32xf32>
    %51 = arith.addf %49, %50 : vector<16x32xf32>
    %cst_24 = arith.constant dense<0.000000e+00> : vector<16x32xf32>
    %52 = tpu.matmul %29, %4, %cst_24 {dimension_numbers = #tpu.dot_dimension_numbers<[1], [0], [0], [1], [0, 0, 1, 1], [], []>} : vector<16x32xf32>, vector<32x32xf32>, vector<16x32xf32> -> vector<16x32xf32>
    %cst_25 = arith.constant 0.353553385 : f32
    %53 = vector.broadcast %cst_25 : f32 to vector<16x32xf32>
    %54 = arith.mulf %52, %53 : vector<16x32xf32>
    %cst_26 = arith.constant dense<0.000000e+00> : vector<16x32xf32>
    %55 = tpu.matmul %51, %5, %cst_26 {dimension_numbers = #tpu.dot_dimension_numbers<[1], [0], [0], [1], [0, 0, 1, 1], [], []>} : vector<16x32xf32>, vector<32x32xf32>, vector<16x32xf32> -> vector<16x32xf32>
    %cst_27 = arith.constant dense<0.000000e+00> : vector<16x32xf32>
    %56 = tpu.matmul %51, %6, %cst_27 {dimension_numbers = #tpu.dot_dimension_numbers<[1], [0], [0], [1], [0, 0, 1, 1], [], []>} : vector<16x32xf32>, vector<32x32xf32>, vector<16x32xf32> -> vector<16x32xf32>
    %57 = vector.extract_strided_slice %54 {offsets = [0, 0], sizes = [8, 32], strides = [1, 1]} : vector<16x32xf32> to vector<8x32xf32>
    %58 = vector.extract_strided_slice %55 {offsets = [0, 0], sizes = [8, 32], strides = [1, 1]} : vector<16x32xf32> to vector<8x32xf32>
    %59 = vector.extract_strided_slice %56 {offsets = [0, 0], sizes = [8, 32], strides = [1, 1]} : vector<16x32xf32> to vector<8x32xf32>
    %cst_28 = arith.constant 0.000000e+00 : f32
    %60 = vector.broadcast %cst_28 : f32 to vector<8x32xf32>
    %61 = vector.extract_strided_slice %57 {offsets = [0, 0], sizes = [8, 8], strides = [1, 1]} : vector<8x32xf32> to vector<8x8xf32>
    %62 = vector.extract_strided_slice %58 {offsets = [0, 0], sizes = [8, 8], strides = [1, 1]} : vector<8x32xf32> to vector<8x8xf32>
    %63 = vector.extract_strided_slice %59 {offsets = [0, 0], sizes = [8, 8], strides = [1, 1]} : vector<8x32xf32> to vector<8x8xf32>
    %cst_29 = arith.constant dense<0.000000e+00> : vector<8x8xf32>
    %64 = tpu.matmul %61, %62, %cst_29 {dimension_numbers = #tpu.dot_dimension_numbers<[1], [1], [0], [0], [0, 0, 1, 0], [], []>} : vector<8x8xf32>, vector<8x8xf32>, vector<8x8xf32> -> vector<8x8xf32>
    %cst_30 = arith.constant dense<0xFF800000> : vector<8xf32>
    %65 = vector.multi_reduction <maximumf>, %64, %cst_30 [1] : vector<8x8xf32> to vector<8xf32>
    %66 = vector.shape_cast %65 : vector<8xf32> to vector<8x1xf32>
    %67 = vector.broadcast %66 : vector<8x1xf32> to vector<8x8xf32>
    %68 = arith.subf %64, %67 : vector<8x8xf32>
    %69 = math.exp %68 : vector<8x8xf32>
    %cst_31 = arith.constant dense<0.000000e+00> : vector<8xf32>
    %70 = vector.multi_reduction <add>, %69, %cst_31 [1] : vector<8x8xf32> to vector<8xf32>
    %71 = vector.shape_cast %70 : vector<8xf32> to vector<8x1xf32>
    %72 = tpu.reciprocal %71 {approx = true} : vector<8x1xf32> -> vector<8x1xf32>
    %73 = vector.broadcast %72 : vector<8x1xf32> to vector<8x8xf32>
    %74 = arith.mulf %69, %73 : vector<8x8xf32>
    %cst_32 = arith.constant dense<0.000000e+00> : vector<8x8xf32>
    %75 = tpu.matmul %74, %63, %cst_32 {dimension_numbers = #tpu.dot_dimension_numbers<[1], [0], [0], [1], [0, 0, 1, 1], [], []>} : vector<8x8xf32>, vector<8x8xf32>, vector<8x8xf32> -> vector<8x8xf32>
    %76 = vector.extract_strided_slice %7 {offsets = [0, 0], sizes = [8, 32], strides = [1, 1]} : vector<32x32xf32> to vector<8x32xf32>
    %cst_33 = arith.constant dense<0.000000e+00> : vector<8x32xf32>
    %77 = tpu.matmul %75, %76, %cst_33 {dimension_numbers = #tpu.dot_dimension_numbers<[1], [0], [0], [1], [0, 0, 1, 1], [], []>} : vector<8x8xf32>, vector<8x32xf32>, vector<8x32xf32> -> vector<8x32xf32>
    %78 = arith.addf %60, %77 : vector<8x32xf32>
    %79 = vector.extract_strided_slice %57 {offsets = [0, 8], sizes = [8, 8], strides = [1, 1]} : vector<8x32xf32> to vector<8x8xf32>
    %80 = vector.extract_strided_slice %58 {offsets = [0, 8], sizes = [8, 8], strides = [1, 1]} : vector<8x32xf32> to vector<8x8xf32>
    %81 = vector.extract_strided_slice %59 {offsets = [0, 8], sizes = [8, 8], strides = [1, 1]} : vector<8x32xf32> to vector<8x8xf32>
    %cst_34 = arith.constant dense<0.000000e+00> : vector<8x8xf32>
    %82 = tpu.matmul %79, %80, %cst_34 {dimension_numbers = #tpu.dot_dimension_numbers<[1], [1], [0], [0], [0, 0, 1, 0], [], []>} : vector<8x8xf32>, vector<8x8xf32>, vector<8x8xf32> -> vector<8x8xf32>
    %cst_35 = arith.constant dense<0xFF800000> : vector<8xf32>
    %83 = vector.multi_reduction <maximumf>, %82, %cst_35 [1] : vector<8x8xf32> to vector<8xf32>
    %84 = vector.shape_cast %83 : vector<8xf32> to vector<8x1xf32>
    %85 = vector.broadcast %84 : vector<8x1xf32> to vector<8x8xf32>
    %86 = arith.subf %82, %85 : vector<8x8xf32>
    %87 = math.exp %86 : vector<8x8xf32>
    %cst_36 = arith.constant dense<0.000000e+00> : vector<8xf32>
    %88 = vector.multi_reduction <add>, %87, %cst_36 [1] : vector<8x8xf32> to vector<8xf32>
    %89 = vector.shape_cast %88 : vector<8xf32> to vector<8x1xf32>
    %90 = tpu.reciprocal %89 {approx = true} : vector<8x1xf32> -> vector<8x1xf32>
    %91 = vector.broadcast %90 : vector<8x1xf32> to vector<8x8xf32>
    %92 = arith.mulf %87, %91 : vector<8x8xf32>
    %cst_37 = arith.constant dense<0.000000e+00> : vector<8x8xf32>
    %93 = tpu.matmul %92, %81, %cst_37 {dimension_numbers = #tpu.dot_dimension_numbers<[1], [0], [0], [1], [0, 0, 1, 1], [], []>} : vector<8x8xf32>, vector<8x8xf32>, vector<8x8xf32> -> vector<8x8xf32>
    %94 = vector.extract_strided_slice %7 {offsets = [8, 0], sizes = [8, 32], strides = [1, 1]} : vector<32x32xf32> to vector<8x32xf32>
    %cst_38 = arith.constant dense<0.000000e+00> : vector<8x32xf32>
    %95 = tpu.matmul %93, %94, %cst_38 {dimension_numbers = #tpu.dot_dimension_numbers<[1], [0], [0], [1], [0, 0, 1, 1], [], []>} : vector<8x8xf32>, vector<8x32xf32>, vector<8x32xf32> -> vector<8x32xf32>
    %96 = arith.addf %78, %95 : vector<8x32xf32>
    %97 = vector.extract_strided_slice %57 {offsets = [0, 16], sizes = [8, 8], strides = [1, 1]} : vector<8x32xf32> to vector<8x8xf32>
    %98 = vector.extract_strided_slice %58 {offsets = [0, 16], sizes = [8, 8], strides = [1, 1]} : vector<8x32xf32> to vector<8x8xf32>
    %99 = vector.extract_strided_slice %59 {offsets = [0, 16], sizes = [8, 8], strides = [1, 1]} : vector<8x32xf32> to vector<8x8xf32>
    %cst_39 = arith.constant dense<0.000000e+00> : vector<8x8xf32>
    %100 = tpu.matmul %97, %98, %cst_39 {dimension_numbers = #tpu.dot_dimension_numbers<[1], [1], [0], [0], [0, 0, 1, 0], [], []>} : vector<8x8xf32>, vector<8x8xf32>, vector<8x8xf32> -> vector<8x8xf32>
    %cst_40 = arith.constant dense<0xFF800000> : vector<8xf32>
    %101 = vector.multi_reduction <maximumf>, %100, %cst_40 [1] : vector<8x8xf32> to vector<8xf32>
    %102 = vector.shape_cast %101 : vector<8xf32> to vector<8x1xf32>
    %103 = vector.broadcast %102 : vector<8x1xf32> to vector<8x8xf32>
    %104 = arith.subf %100, %103 : vector<8x8xf32>
    %105 = math.exp %104 : vector<8x8xf32>
    %cst_41 = arith.constant dense<0.000000e+00> : vector<8xf32>
    %106 = vector.multi_reduction <add>, %105, %cst_41 [1] : vector<8x8xf32> to vector<8xf32>
    %107 = vector.shape_cast %106 : vector<8xf32> to vector<8x1xf32>
    %108 = tpu.reciprocal %107 {approx = true} : vector<8x1xf32> -> vector<8x1xf32>
    %109 = vector.broadcast %108 : vector<8x1xf32> to vector<8x8xf32>
    %110 = arith.mulf %105, %109 : vector<8x8xf32>
    %cst_42 = arith.constant dense<0.000000e+00> : vector<8x8xf32>
    %111 = tpu.matmul %110, %99, %cst_42 {dimension_numbers = #tpu.dot_dimension_numbers<[1], [0], [0], [1], [0, 0, 1, 1], [], []>} : vector<8x8xf32>, vector<8x8xf32>, vector<8x8xf32> -> vector<8x8xf32>
    %112 = vector.extract_strided_slice %7 {offsets = [16, 0], sizes = [8, 32], strides = [1, 1]} : vector<32x32xf32> to vector<8x32xf32>
    %cst_43 = arith.constant dense<0.000000e+00> : vector<8x32xf32>
    %113 = tpu.matmul %111, %112, %cst_43 {dimension_numbers = #tpu.dot_dimension_numbers<[1], [0], [0], [1], [0, 0, 1, 1], [], []>} : vector<8x8xf32>, vector<8x32xf32>, vector<8x32xf32> -> vector<8x32xf32>
    %114 = arith.addf %96, %113 : vector<8x32xf32>
    %115 = vector.extract_strided_slice %57 {offsets = [0, 24], sizes = [8, 8], strides = [1, 1]} : vector<8x32xf32> to vector<8x8xf32>
    %116 = vector.extract_strided_slice %58 {offsets = [0, 24], sizes = [8, 8], strides = [1, 1]} : vector<8x32xf32> to vector<8x8xf32>
    %117 = vector.extract_strided_slice %59 {offsets = [0, 24], sizes = [8, 8], strides = [1, 1]} : vector<8x32xf32> to vector<8x8xf32>
    %cst_44 = arith.constant dense<0.000000e+00> : vector<8x8xf32>
    %118 = tpu.matmul %115, %116, %cst_44 {dimension_numbers = #tpu.dot_dimension_numbers<[1], [1], [0], [0], [0, 0, 1, 0], [], []>} : vector<8x8xf32>, vector<8x8xf32>, vector<8x8xf32> -> vector<8x8xf32>
    %cst_45 = arith.constant dense<0xFF800000> : vector<8xf32>
    %119 = vector.multi_reduction <maximumf>, %118, %cst_45 [1] : vector<8x8xf32> to vector<8xf32>
    %120 = vector.shape_cast %119 : vector<8xf32> to vector<8x1xf32>
    %121 = vector.broadcast %120 : vector<8x1xf32> to vector<8x8xf32>
    %122 = arith.subf %118, %121 : vector<8x8xf32>
    %123 = math.exp %122 : vector<8x8xf32>
    %cst_46 = arith.constant dense<0.000000e+00> : vector<8xf32>
    %124 = vector.multi_reduction <add>, %123, %cst_46 [1] : vector<8x8xf32> to vector<8xf32>
    %125 = vector.shape_cast %124 : vector<8xf32> to vector<8x1xf32>
    %126 = tpu.reciprocal %125 {approx = true} : vector<8x1xf32> -> vector<8x1xf32>
    %127 = vector.broadcast %126 : vector<8x1xf32> to vector<8x8xf32>
    %128 = arith.mulf %123, %127 : vector<8x8xf32>
    %cst_47 = arith.constant dense<0.000000e+00> : vector<8x8xf32>
    %129 = tpu.matmul %128, %117, %cst_47 {dimension_numbers = #tpu.dot_dimension_numbers<[1], [0], [0], [1], [0, 0, 1, 1], [], []>} : vector<8x8xf32>, vector<8x8xf32>, vector<8x8xf32> -> vector<8x8xf32>
    %130 = vector.extract_strided_slice %7 {offsets = [24, 0], sizes = [8, 32], strides = [1, 1]} : vector<32x32xf32> to vector<8x32xf32>
    %cst_48 = arith.constant dense<0.000000e+00> : vector<8x32xf32>
    %131 = tpu.matmul %129, %130, %cst_48 {dimension_numbers = #tpu.dot_dimension_numbers<[1], [0], [0], [1], [0, 0, 1, 1], [], []>} : vector<8x8xf32>, vector<8x32xf32>, vector<8x32xf32> -> vector<8x32xf32>
    %132 = arith.addf %114, %131 : vector<8x32xf32>
    %133 = vector.extract_strided_slice %54 {offsets = [8, 0], sizes = [8, 32], strides = [1, 1]} : vector<16x32xf32> to vector<8x32xf32>
    %134 = vector.extract_strided_slice %55 {offsets = [8, 0], sizes = [8, 32], strides = [1, 1]} : vector<16x32xf32> to vector<8x32xf32>
    %135 = vector.extract_strided_slice %56 {offsets = [8, 0], sizes = [8, 32], strides = [1, 1]} : vector<16x32xf32> to vector<8x32xf32>
    %cst_49 = arith.constant 0.000000e+00 : f32
    %136 = vector.broadcast %cst_49 : f32 to vector<8x32xf32>
    %137 = vector.extract_strided_slice %133 {offsets = [0, 0], sizes = [8, 8], strides = [1, 1]} : vector<8x32xf32> to vector<8x8xf32>
    %138 = vector.extract_strided_slice %134 {offsets = [0, 0], sizes = [8, 8], strides = [1, 1]} : vector<8x32xf32> to vector<8x8xf32>
    %139 = vector.extract_strided_slice %135 {offsets = [0, 0], sizes = [8, 8], strides = [1, 1]} : vector<8x32xf32> to vector<8x8xf32>
    %cst_50 = arith.constant dense<0.000000e+00> : vector<8x8xf32>
    %140 = tpu.matmul %137, %138, %cst_50 {dimension_numbers = #tpu.dot_dimension_numbers<[1], [1], [0], [0], [0, 0, 1, 0], [], []>} : vector<8x8xf32>, vector<8x8xf32>, vector<8x8xf32> -> vector<8x8xf32>
    %cst_51 = arith.constant dense<0xFF800000> : vector<8xf32>
    %141 = vector.multi_reduction <maximumf>, %140, %cst_51 [1] : vector<8x8xf32> to vector<8xf32>
    %142 = vector.shape_cast %141 : vector<8xf32> to vector<8x1xf32>
    %143 = vector.broadcast %142 : vector<8x1xf32> to vector<8x8xf32>
    %144 = arith.subf %140, %143 : vector<8x8xf32>
    %145 = math.exp %144 : vector<8x8xf32>
    %cst_52 = arith.constant dense<0.000000e+00> : vector<8xf32>
    %146 = vector.multi_reduction <add>, %145, %cst_52 [1] : vector<8x8xf32> to vector<8xf32>
    %147 = vector.shape_cast %146 : vector<8xf32> to vector<8x1xf32>
    %148 = tpu.reciprocal %147 {approx = true} : vector<8x1xf32> -> vector<8x1xf32>
    %149 = vector.broadcast %148 : vector<8x1xf32> to vector<8x8xf32>
    %150 = arith.mulf %145, %149 : vector<8x8xf32>
    %cst_53 = arith.constant dense<0.000000e+00> : vector<8x8xf32>
    %151 = tpu.matmul %150, %139, %cst_53 {dimension_numbers = #tpu.dot_dimension_numbers<[1], [0], [0], [1], [0, 0, 1, 1], [], []>} : vector<8x8xf32>, vector<8x8xf32>, vector<8x8xf32> -> vector<8x8xf32>
    %152 = vector.extract_strided_slice %7 {offsets = [0, 0], sizes = [8, 32], strides = [1, 1]} : vector<32x32xf32> to vector<8x32xf32>
    %cst_54 = arith.constant dense<0.000000e+00> : vector<8x32xf32>
    %153 = tpu.matmul %151, %152, %cst_54 {dimension_numbers = #tpu.dot_dimension_numbers<[1], [0], [0], [1], [0, 0, 1, 1], [], []>} : vector<8x8xf32>, vector<8x32xf32>, vector<8x32xf32> -> vector<8x32xf32>
    %154 = arith.addf %136, %153 : vector<8x32xf32>
    %155 = vector.extract_strided_slice %133 {offsets = [0, 8], sizes = [8, 8], strides = [1, 1]} : vector<8x32xf32> to vector<8x8xf32>
    %156 = vector.extract_strided_slice %134 {offsets = [0, 8], sizes = [8, 8], strides = [1, 1]} : vector<8x32xf32> to vector<8x8xf32>
    %157 = vector.extract_strided_slice %135 {offsets = [0, 8], sizes = [8, 8], strides = [1, 1]} : vector<8x32xf32> to vector<8x8xf32>
    %cst_55 = arith.constant dense<0.000000e+00> : vector<8x8xf32>
    %158 = tpu.matmul %155, %156, %cst_55 {dimension_numbers = #tpu.dot_dimension_numbers<[1], [1], [0], [0], [0, 0, 1, 0], [], []>} : vector<8x8xf32>, vector<8x8xf32>, vector<8x8xf32> -> vector<8x8xf32>
    %cst_56 = arith.constant dense<0xFF800000> : vector<8xf32>
    %159 = vector.multi_reduction <maximumf>, %158, %cst_56 [1] : vector<8x8xf32> to vector<8xf32>
    %160 = vector.shape_cast %159 : vector<8xf32> to vector<8x1xf32>
    %161 = vector.broadcast %160 : vector<8x1xf32> to vector<8x8xf32>
    %162 = arith.subf %158, %161 : vector<8x8xf32>
    %163 = math.exp %162 : vector<8x8xf32>
    %cst_57 = arith.constant dense<0.000000e+00> : vector<8xf32>
    %164 = vector.multi_reduction <add>, %163, %cst_57 [1] : vector<8x8xf32> to vector<8xf32>
    %165 = vector.shape_cast %164 : vector<8xf32> to vector<8x1xf32>
    %166 = tpu.reciprocal %165 {approx = true} : vector<8x1xf32> -> vector<8x1xf32>
    %167 = vector.broadcast %166 : vector<8x1xf32> to vector<8x8xf32>
    %168 = arith.mulf %163, %167 : vector<8x8xf32>
    %cst_58 = arith.constant dense<0.000000e+00> : vector<8x8xf32>
    %169 = tpu.matmul %168, %157, %cst_58 {dimension_numbers = #tpu.dot_dimension_numbers<[1], [0], [0], [1], [0, 0, 1, 1], [], []>} : vector<8x8xf32>, vector<8x8xf32>, vector<8x8xf32> -> vector<8x8xf32>
    %170 = vector.extract_strided_slice %7 {offsets = [8, 0], sizes = [8, 32], strides = [1, 1]} : vector<32x32xf32> to vector<8x32xf32>
    %cst_59 = arith.constant dense<0.000000e+00> : vector<8x32xf32>
    %171 = tpu.matmul %169, %170, %cst_59 {dimension_numbers = #tpu.dot_dimension_numbers<[1], [0], [0], [1], [0, 0, 1, 1], [], []>} : vector<8x8xf32>, vector<8x32xf32>, vector<8x32xf32> -> vector<8x32xf32>
    %172 = arith.addf %154, %171 : vector<8x32xf32>
    %173 = vector.extract_strided_slice %133 {offsets = [0, 16], sizes = [8, 8], strides = [1, 1]} : vector<8x32xf32> to vector<8x8xf32>
    %174 = vector.extract_strided_slice %134 {offsets = [0, 16], sizes = [8, 8], strides = [1, 1]} : vector<8x32xf32> to vector<8x8xf32>
    %175 = vector.extract_strided_slice %135 {offsets = [0, 16], sizes = [8, 8], strides = [1, 1]} : vector<8x32xf32> to vector<8x8xf32>
    %cst_60 = arith.constant dense<0.000000e+00> : vector<8x8xf32>
    %176 = tpu.matmul %173, %174, %cst_60 {dimension_numbers = #tpu.dot_dimension_numbers<[1], [1], [0], [0], [0, 0, 1, 0], [], []>} : vector<8x8xf32>, vector<8x8xf32>, vector<8x8xf32> -> vector<8x8xf32>
    %cst_61 = arith.constant dense<0xFF800000> : vector<8xf32>
    %177 = vector.multi_reduction <maximumf>, %176, %cst_61 [1] : vector<8x8xf32> to vector<8xf32>
    %178 = vector.shape_cast %177 : vector<8xf32> to vector<8x1xf32>
    %179 = vector.broadcast %178 : vector<8x1xf32> to vector<8x8xf32>
    %180 = arith.subf %176, %179 : vector<8x8xf32>
    %181 = math.exp %180 : vector<8x8xf32>
    %cst_62 = arith.constant dense<0.000000e+00> : vector<8xf32>
    %182 = vector.multi_reduction <add>, %181, %cst_62 [1] : vector<8x8xf32> to vector<8xf32>
    %183 = vector.shape_cast %182 : vector<8xf32> to vector<8x1xf32>
    %184 = tpu.reciprocal %183 {approx = true} : vector<8x1xf32> -> vector<8x1xf32>
    %185 = vector.broadcast %184 : vector<8x1xf32> to vector<8x8xf32>
    %186 = arith.mulf %181, %185 : vector<8x8xf32>
    %cst_63 = arith.constant dense<0.000000e+00> : vector<8x8xf32>
    %187 = tpu.matmul %186, %175, %cst_63 {dimension_numbers = #tpu.dot_dimension_numbers<[1], [0], [0], [1], [0, 0, 1, 1], [], []>} : vector<8x8xf32>, vector<8x8xf32>, vector<8x8xf32> -> vector<8x8xf32>
    %188 = vector.extract_strided_slice %7 {offsets = [16, 0], sizes = [8, 32], strides = [1, 1]} : vector<32x32xf32> to vector<8x32xf32>
    %cst_64 = arith.constant dense<0.000000e+00> : vector<8x32xf32>
    %189 = tpu.matmul %187, %188, %cst_64 {dimension_numbers = #tpu.dot_dimension_numbers<[1], [0], [0], [1], [0, 0, 1, 1], [], []>} : vector<8x8xf32>, vector<8x32xf32>, vector<8x32xf32> -> vector<8x32xf32>
    %190 = arith.addf %172, %189 : vector<8x32xf32>
    %191 = vector.extract_strided_slice %133 {offsets = [0, 24], sizes = [8, 8], strides = [1, 1]} : vector<8x32xf32> to vector<8x8xf32>
    %192 = vector.extract_strided_slice %134 {offsets = [0, 24], sizes = [8, 8], strides = [1, 1]} : vector<8x32xf32> to vector<8x8xf32>
    %193 = vector.extract_strided_slice %135 {offsets = [0, 24], sizes = [8, 8], strides = [1, 1]} : vector<8x32xf32> to vector<8x8xf32>
    %cst_65 = arith.constant dense<0.000000e+00> : vector<8x8xf32>
    %194 = tpu.matmul %191, %192, %cst_65 {dimension_numbers = #tpu.dot_dimension_numbers<[1], [1], [0], [0], [0, 0, 1, 0], [], []>} : vector<8x8xf32>, vector<8x8xf32>, vector<8x8xf32> -> vector<8x8xf32>
    %cst_66 = arith.constant dense<0xFF800000> : vector<8xf32>
    %195 = vector.multi_reduction <maximumf>, %194, %cst_66 [1] : vector<8x8xf32> to vector<8xf32>
    %196 = vector.shape_cast %195 : vector<8xf32> to vector<8x1xf32>
    %197 = vector.broadcast %196 : vector<8x1xf32> to vector<8x8xf32>
    %198 = arith.subf %194, %197 : vector<8x8xf32>
    %199 = math.exp %198 : vector<8x8xf32>
    %cst_67 = arith.constant dense<0.000000e+00> : vector<8xf32>
    %200 = vector.multi_reduction <add>, %199, %cst_67 [1] : vector<8x8xf32> to vector<8xf32>
    %201 = vector.shape_cast %200 : vector<8xf32> to vector<8x1xf32>
    %202 = tpu.reciprocal %201 {approx = true} : vector<8x1xf32> -> vector<8x1xf32>
    %203 = vector.broadcast %202 : vector<8x1xf32> to vector<8x8xf32>
    %204 = arith.mulf %199, %203 : vector<8x8xf32>
    %cst_68 = arith.constant dense<0.000000e+00> : vector<8x8xf32>
    %205 = tpu.matmul %204, %193, %cst_68 {dimension_numbers = #tpu.dot_dimension_numbers<[1], [0], [0], [1], [0, 0, 1, 1], [], []>} : vector<8x8xf32>, vector<8x8xf32>, vector<8x8xf32> -> vector<8x8xf32>
    %206 = vector.extract_strided_slice %7 {offsets = [24, 0], sizes = [8, 32], strides = [1, 1]} : vector<32x32xf32> to vector<8x32xf32>
    %cst_69 = arith.constant dense<0.000000e+00> : vector<8x32xf32>
    %207 = tpu.matmul %205, %206, %cst_69 {dimension_numbers = #tpu.dot_dimension_numbers<[1], [0], [0], [1], [0, 0, 1, 1], [], []>} : vector<8x8xf32>, vector<8x32xf32>, vector<8x32xf32> -> vector<8x32xf32>
    %208 = arith.addf %190, %207 : vector<8x32xf32>
    %209 = tpu.concatenate %132, %208 in 0 : vector<8x32xf32>, vector<8x32xf32> -> vector<16x32xf32>
    %c0_70 = arith.constant 0 : index
    %c0_71 = arith.constant 0 : index
    %210 = vector.load %arg8[%c0_70, %c0_71] : memref<1x1xi32, #tpu.memory_space<vmem>>, vector<1x1xi32>
    %211 = tpu.iota {dimensions = array<i32: 0>} : vector<16x32xi32>
    %212 = tpu.iota {dimensions = array<i32: 1>} : vector<16x32xi32>
    %c16_i32 = arith.constant 16 : i32
    %213 = vector.broadcast %c16_i32 : i32 to vector<16x32xi32>
    %214 = arith.shli %211, %213 : vector<16x32xi32>
    %215 = arith.addi %214, %212 : vector<16x32xi32>
    %216 = vector.broadcast %210 : vector<1x1xi32> to vector<16x32xi32>
    %217 = arith.addi %215, %216 : vector<16x32xi32>
    %c13_i32 = arith.constant 13 : i32
    %218 = vector.broadcast %c13_i32 : i32 to vector<16x32xi32>
    %219 = arith.shli %217, %218 : vector<16x32xi32>
    %220 = arith.xori %217, %219 : vector<16x32xi32>
    %c17_i32 = arith.constant 17 : i32
    %221 = vector.broadcast %c17_i32 : i32 to vector<16x32xi32>
    %222 = arith.shrsi %220, %221 : vector<16x32xi32>
    %c32767_i32 = arith.constant 32767 : i32
    %223 = vector.broadcast %c32767_i32 : i32 to vector<16x32xi32>
    %224 = arith.andi %222, %223 : vector<16x32xi32>
    %225 = arith.xori %220, %224 : vector<16x32xi32>
    %c5_i32 = arith.constant 5 : i32
    %226 = vector.broadcast %c5_i32 : i32 to vector<16x32xi32>
    %227 = arith.shli %225, %226 : vector<16x32xi32>
    %228 = arith.xori %225, %227 : vector<16x32xi32>
    %c-1640531527_i32 = arith.constant -1640531527 : i32
    %229 = vector.broadcast %c-1640531527_i32 : i32 to vector<16x32xi32>
    %230 = arith.addi %228, %229 : vector<16x32xi32>
    %c9_i32 = arith.constant 9 : i32
    %231 = vector.broadcast %c9_i32 : i32 to vector<16x32xi32>
    %232 = arith.shli %230, %231 : vector<16x32xi32>
    %233 = arith.xori %230, %232 : vector<16x32xi32>
    %c11_i32 = arith.constant 11 : i32
    %234 = vector.broadcast %c11_i32 : i32 to vector<16x32xi32>
    %235 = arith.shrsi %233, %234 : vector<16x32xi32>
    %c2097151_i32 = arith.constant 2097151 : i32
    %236 = vector.broadcast %c2097151_i32 : i32 to vector<16x32xi32>
    %237 = arith.andi %235, %236 : vector<16x32xi32>
    %238 = arith.xori %233, %237 : vector<16x32xi32>
    %c7_i32 = arith.constant 7 : i32
    %239 = vector.broadcast %c7_i32 : i32 to vector<16x32xi32>
    %240 = arith.shli %238, %239 : vector<16x32xi32>
    %241 = arith.xori %238, %240 : vector<16x32xi32>
    %c-1717986918_i32 = arith.constant -1717986918 : i32
    %242 = vector.broadcast %c-1717986918_i32 : i32 to vector<16x32xi32>
    %243 = arith.cmpi sge, %241, %242 : vector<16x32xi32>
    %cst_72 = arith.constant 1.11111116 : f32
    %244 = vector.broadcast %cst_72 : f32 to vector<16x32xf32>
    %245 = arith.mulf %209, %244 : vector<16x32xf32>
    %cst_73 = arith.constant 0.000000e+00 : f32
    %246 = vector.broadcast %cst_73 : f32 to vector<16x32xf32>
    %247 = arith.select %243, %245, %246 : vector<16x32xi1>, vector<16x32xf32>
    %248 = arith.addf %0, %247 : vector<16x32xf32>
    %c0_74 = arith.constant 0 : index
    %c0_75 = arith.constant 0 : index
    %249 = vector.load %arg9[%c0_74, %c0_75] : memref<16x32xf32, #tpu.memory_space<vmem>>, vector<16x32xf32>
    tpu.vector_store %arg9[%c0_74, %c0_75], %248 {strides = array<i32>} : memref<16x32xf32, #tpu.memory_space<vmem>>, vector<16x32xf32>,
    return
  }
}

</mosaic_0001>

<bundles_post_ra>
// kernel: tpu_custom_call.1
= control target key start
LH: loop header
LB: loop body
LE: loop exit
PB: predicated region body
PF: predicated region fallthrough
CT: control target
= control target key end

     0   :  { %s3259_s0 = inlined_call_operand.hbm [shape: f32[16,32], index: 0, kind: input, shape index: {}]   ;;  %s3260_s1 = inlined_call_operand.hbm [shape: f32[16,32], index: 1, kind: input, shape index: {}]   ;;  %s3261_s2 = inlined_call_operand.vmem [shape: f32[1,32], index: 2, kind: input, shape index: {}]   ;;  %s3262_s3 = inlined_call_operand.vmem [shape: f32[1,32], index: 3, kind: input, shape index: {}]   ;;  %s3263_s4 = inlined_call_operand.hbm [shape: f32[32,32], index: 4, kind: input, shape index: {}]   ;;  %s3264_s5 = inlined_call_operand.hbm [shape: f32[32,32], index: 5, kind: input, shape index: {}]   ;;  %s3265_s6 = inlined_call_operand.hbm [shape: f32[32,32], index: 6, kind: input, shape index: {}]   ;;  %s3266_s7 = inlined_call_operand.hbm [shape: f32[32,32], index: 7, kind: input, shape index: {}]   ;;  %s3267_s8 = inlined_call_operand.<no memory space> [shape: s32[1,1], index: 8, kind: input, shape index: {}]   ;;  %s3268_s9 = inlined_call_operand.hbm [shape: f32[16,32], index: 9, kind: output, shape index: {}]  }
   0x1   :  { %v14_v0 = vstv %s3267_s8 }
   0x2   :  { %15 = vst [vmem:[#allocation2] sm:$0x1] %v14_v0 }
   0x3   :  { %16 = vsyncpa [#allocation4], 0 }
   0x4   :  { %17 = vsyncpa [#allocation7], 0 }
   0x5   :  { %18 = vsyncpa [#allocation10], 0 }
   0x6   :  { %19 = vsyncpa [#allocation13], 0 }
   0x7   :  { %20 = vsyncpa [#allocation5], 0  ;;  %s2903_s11 = smov [#allocation6]   ;;  %s2904_s13 = smov [#allocation9]  }
   0x8   :  { %s38_s12 = sshll.u32 %s2903_s11, 4  ;;  %s66_s14 = sshll.u32 %s2904_s13, 4  ;;  %s39_s12 = int_to_ptr.vmem [resolvable:$true] %s38_s12  ;;  %s67_s14 = int_to_ptr.vmem [resolvable:$true] %s66_s14 }
   0x9   :  { %s2761_s15 = scalar_lea.vmem %s39_s12, 256  ;;  %p2766_p1 = scmp.lt.s32.totalorder %s39_s12, %s39_s12 }
   0xa   :  { %p2762_p0 = scmp.ne.s32.totalorder %s39_s12, %s2761_s15  ;;  %p2767_p2 = scmp.lt.s32.totalorder %s2761_s15, %s2761_s15 }
   0xc   :  { %p2768_p3 = por %p2767_p2, %p2766_p1 }
   0xe   :  { %p2769_p4 = pnand %p2768_p3, %p2762_p0 }
  0x10   :  { %2772 = shalt.err (!%p2769_p4)
}
  0x11   :  { %s2905_s8 = smov 128   ;;  %s2906_s16 = smov 8  }
  0x12   :  { %44 = dma.hbm_to_vmem [thread:$0]  %s3260_s1, 256, %s39_s12, [#allocation7], %s2905_s8, %s2905_s8, %s2906_s16  }
  0x13   :  { %s2781_s19 = scalar_lea.vmem %s67_s14, 512  ;;  %p2786_p6 = scmp.lt.s32.totalorder %s67_s14, %s67_s14 }
  0x14   :  { %p2782_p5 = scmp.ne.s32.totalorder %s67_s14, %s2781_s19  ;;  %p2787_p7 = scmp.lt.s32.totalorder %s2781_s19, %s2781_s19 }
  0x16   :  { %p2788_p8 = por %p2787_p7, %p2786_p6 }
  0x18   :  { %p2789_p9 = pnand %p2788_p8, %p2782_p5 }
  0x1a   :  { %2792 = shalt.err (!%p2789_p9)
}
  0x1b   :  { %72 = dma.hbm_to_vmem [thread:$0]  %s3264_s5, 512, %s67_s14, [#allocation10], %s2905_s8, %s2905_s8, %s2906_s16  }
  0x1c   :  { %s2907_s22 = smov [#allocation3]   ;;  %s2908_s24 = smov [#allocation8]  }
  0x1d   :  { %s26_s23 = sshll.u32 %s2907_s22, 4  ;;  %s54_s25 = sshll.u32 %s2908_s24, 4  ;;  %s27_s23 = int_to_ptr.vmem [resolvable:$true] %s26_s23  ;;  %s55_s25 = int_to_ptr.vmem [resolvable:$true] %s54_s25 }
  0x1e   :  { %s2801_s1 = scalar_lea.vmem %s27_s23, 256  ;;  %p2806_p11 = scmp.lt.s32.totalorder %s27_s23, %s27_s23 }
  0x1f   :  { %p2802_p10 = scmp.ne.s32.totalorder %s27_s23, %s2801_s1  ;;  %p2807_p12 = scmp.lt.s32.totalorder %s2801_s1, %s2801_s1 }
  0x21   :  { %p2808_p13 = por %p2807_p12, %p2806_p11 }
  0x23   :  { %p2809_p0 = pnand %p2808_p13, %p2802_p10 }
  0x25   :  { %2812 = shalt.err (!%p2809_p0)
}
  0x26   :  { %32 = dma.hbm_to_vmem [thread:$0]  %s3259_s0, 256, %s27_s23, [#allocation4], %s2905_s8, %s2905_s8, %s2906_s16  }
  0x27   :  { %s2821_s5 = scalar_lea.vmem %s55_s25, 512  ;;  %p2826_p2 = scmp.lt.s32.totalorder %s55_s25, %s55_s25 }
  0x28   :  { %p2822_p1 = scmp.ne.s32.totalorder %s55_s25, %s2821_s5  ;;  %p2827_p3 = scmp.lt.s32.totalorder %s2821_s5, %s2821_s5 }
  0x2a   :  { %p2828_p4 = por %p2827_p3, %p2826_p2 }
  0x2c   :  { %p2829_p5 = pnand %p2828_p4, %p2822_p1 }
  0x2e   :  { %2832 = shalt.err (!%p2829_p5)
}
  0x2f   :  { %60 = dma.hbm_to_vmem [thread:$0]  %s3263_s4, 512, %s55_s25, [#allocation7], %s2905_s8, %s2905_s8, %s2906_s16  }
  0x30   :  { %s2909_s30 = smov [#allocation11]   ;;  %s2910_s11 = smov [#allocation12]  }
  0x31   :  { %s78_s10 = sshll.u32 %s2909_s30, 4  ;;  %s90_s12 = sshll.u32 %s2910_s11, 4  ;;  %s79_s10 = int_to_ptr.vmem [resolvable:$true] %s78_s10  ;;  %s91_s12 = int_to_ptr.vmem [resolvable:$true] %s90_s12 }
  0x32   :  { %s2841_s0 = scalar_lea.vmem %s79_s10, 512  ;;  %p2846_p7 = scmp.lt.s32.totalorder %s79_s10, %s79_s10 }
  0x33   :  { %p2842_p6 = scmp.ne.s32.totalorder %s79_s10, %s2841_s0  ;;  %p2847_p8 = scmp.lt.s32.totalorder %s2841_s0, %s2841_s0 }
  0x35   :  { %p2848_p9 = por %p2847_p8, %p2846_p7 }
  0x37   :  { %p2849_p10 = pnand %p2848_p9, %p2842_p6 }
  0x39   :  { %2852 = shalt.err (!%p2849_p10)
}
  0x3a   :  { %84 = dma.hbm_to_vmem [thread:$0]  %s3265_s6, 512, %s79_s10, [#allocation10], %s2905_s8, %s2905_s8, %s2906_s16  }
  0x3b   :  { %s2861_s4 = scalar_lea.vmem %s91_s12, 512  ;;  %p2866_p12 = scmp.lt.s32.totalorder %s91_s12, %s91_s12 }
  0x3c   :  { %p2862_p11 = scmp.ne.s32.totalorder %s91_s12, %s2861_s4  ;;  %p2867_p13 = scmp.lt.s32.totalorder %s2861_s4, %s2861_s4 }
  0x3e   :  { %p2868_p0 = por %p2867_p13, %p2866_p12 }
  0x40   :  { %p2869_p1 = pnand %p2868_p0, %p2862_p11 }
  0x42   :  { %2872 = shalt.err (!%p2869_p1)
}
  0x43   :  { %96 = dma.hbm_to_vmem [thread:$0]  %s3266_s7, 512, %s91_s12, [#allocation13], %s2905_s8, %s2905_s8, %s2906_s16  }
  0x44   :  { %2893 = dma.done.wait [#allocation4], 256  }
  0x45   :  { %2894 = vsyncadd [#allocation4], 4294967040 }
  0x46   :  { %2895 = dma.done.wait [#allocation7], 768  }
  0x47   :  { %2896 = vsyncadd [#allocation7], 4294966528 }
  0x48   :  { %2897 = dma.done.wait [#allocation10], 1024  }
  0x49   :  { %2898 = vsyncadd [#allocation10], 4294966272 }
  0x4a   :  { %2899 = dma.done.wait [#allocation13], 512  }
  0x4b   :  { %2900 = vsyncadd [#allocation13], 4294966784  ;;  %vm139_vm0 = vcmask 261120   ;;  %v119_v1 = vld [vmem:[#allocation6] sm:$0xff]  ;;  %v120_v2 = vld [vmem:[#allocation6 + $0x8] sm:$0xff]  ;;  %vm2912_vm1 = vmmov 0  }
  0x4c   :  { %v3007_v3 = vld [vmem:[#allocation3] sm:$0xff]  ;;  %v183_v4 = vsel %vm139_vm0, %v119_v1, 0.0  ;;  %v186_v5 = vsel %vm139_vm0, %v120_v2, 0.0  ;;  %v3011_v6 = vld [vmem:[#allocation3 + $0x8] sm:$0xff]  ;;  %v130_v29 = vld [vmem:[#allocation9 + $0x18] sm:$0xff]  ;;  %vm452_vm2 = vcmask 64512  }
  0x4d   :  { %184 = vadd.xlane.f32.xlu0 %v183_v4  ;;  %187 = vadd.xlane.f32.xlu1 %v186_v5  ;;  %v140_v7 = vsel %vm139_vm0, %v3007_v3, 0.0  ;;  %v143_v8 = vsel %vm139_vm0, %v3011_v6, 0.0  ;;  %v129_v30 = vld [vmem:[#allocation9 + $0x10] sm:$0xff]  ;;  %v126_v31 = vld [vmem:[#allocation8 + $0x18] sm:$0xff]  ;;  %v128_v32 = vld [vmem:[#allocation9 + $0x8] sm:$0xff]  ;;  %s2915_s20 = smov 104  }
  0x4e   :  { %2554 = vmatprep.subr.mxu1 %v130_v29  ;;  %2543 = vmatprep.subr.mxu0 %v126_v31  ;;  %v125_v33 = vld [vmem:[#allocation8 + $0x10] sm:$0xff]  ;;  %v127_v34 = vld [vmem:[#allocation9] sm:$0xff]  ;;  %v124_v35 = vld [vmem:[#allocation8 + $0x8] sm:$0xff]  ;;  %s2917_s21 = smov [#allocation14]  }
  0x4f   :  { %2555 = vmatpush3.msra.mxu1 %v130_v29  ;;  %2544 = vmatpush3.msra.mxu0 %v126_v31  ;;  %v123_v36 = vld [vmem:[#allocation8] sm:$0xff]  ;;  %v134_v37 = vld [vmem:[#allocation11 + $0x18] sm:$0xff]  ;;  %v133_v5 = vld [vmem:[#allocation11 + $0x10] sm:$0xff]  ;;  %s2417_s22 = sshll.u32 %s2917_s21, 4  ;;  %s2418_s22 = int_to_ptr.vmem [resolvable:$true] %s2417_s22 }
  0x50   :  { %2556 = vmatprep.subr.mxu1 %v129_v30  ;;  %2545 = vmatprep.subr.mxu0 %v125_v33  ;;  %v2432_v51 = vld [vmem:[%s3261_s2] ss:$0 sm:$0xff]  ;;  %s2913_s2 = smov 120   ;;  %s2873_s23 = scalar_lea.vmem %s2418_s22, 256 }
  0x51   :  { %141 = vadd.xlane.f32.xlu0 %v140_v7  ;;  %144 = vadd.xlane.f32.xlu1 %v143_v8  ;;  %v2433_v53 = vld [vmem:[%s3262_s3] ss:$0 sm:$0xff]  ;;  %v132_v7 = vld [vmem:[#allocation11 + $0x8] sm:$0xff]  ;;  %v131_v8 = vld [vmem:[#allocation11] sm:$0xff]  ;;  %s2914_s3 = smov 112   ;;  %p2874_p2 = scmp.ne.s32.totalorder %s2418_s22, %s2873_s23 }
  0x52   :  { %2557 = vmatpush3.msra.mxu1 %v129_v30  ;;  %2546 = vmatpush3.msra.mxu0 %v125_v33  ;;  %p2878_p3 = scmp.lt.s32.totalorder %s2418_s22, %s2418_s22  ;;  %p2879_p4 = scmp.lt.s32.totalorder %s2873_s23, %s2873_s23 }
  0x53   :  { %2558 = vmatprep.subr.mxu1 %v128_v32  ;;  %2547 = vmatprep.subr.mxu0 %v124_v35 }
  0x54   :  { %2559 = vmatpush3.msra.mxu1 %v128_v32  ;;  %2548 = vmatpush3.msra.mxu0 %v124_v35  ;;  %p2880_p5 = por %p2879_p4, %p2878_p3 }
  0x55   :  { %2560 = vmatprep.subr.mxu1 %v127_v34  ;;  %2549 = vmatprep.subr.mxu0 %v123_v36 }
  0x56   :  { %2561 = vmatpush3.msra.mxu1 %v127_v34  ;;  %2550 = vmatpush3.msra.mxu0 %v123_v36  ;;  %p2881_p6 = pnand %p2880_p5, %p2874_p2 }
  0x57   :  { %2565 = vmatprep.subr.mxu0 %v134_v37 }
  0xd6   :  { %v185_v9 = vpop.xlane.xlu0 %184  ;;  %v188_v10 = vpop.xlane.xlu1 %187 }
  0xd7   :  { %v189_v11 = vmul.f32 0.03125, %v185_v9  ;;  %v190_v12 = vmul.f32 0.03125, %v188_v10  ;;  %v2911_v9 = vmov 0.0  }
  0xd8   :  { %2576 = vmatprep.subr.mxu1 %v2911_v9 }
  0xd9   :  { %v3017_v13 = vsub.f32 %v119_v1, %v189_v11  ;;  %v3019_v14 = vsub.f32 %v120_v2, %v190_v12 }
  0xda   :  { %v142_v15 = vpop.xlane.xlu0 %141  ;;  %v145_v16 = vpop.xlane.xlu1 %144 }
  0xdb   :  { %v147_v17 = vmul.f32 0.03125, %v142_v15  ;;  %v148_v18 = vmul.f32 0.03125, %v145_v16  ;;  %v193_v19 = vmul.f32 %v3017_v13, %v3017_v13  ;;  %v194_v20 = vmul.f32 %v3019_v14, %v3019_v14 }
  0xdd   :  { %v149_v21 = vsub.f32 %v3007_v3, %v147_v17  ;;  %v3027_v22 = vsub.f32 %v3011_v6, %v148_v18  ;;  %v195_v23 = vsel %vm139_vm0, %v193_v19, 0.0  ;;  %v198_v24 = vsel %vm139_vm0, %v194_v20, 0.0 }
  0xde   :  { %196 = vadd.xlane.f32.xlu0 %v195_v23 }
  0xdf   :  { %v151_v25 = vmul.f32 %v149_v21, %v149_v21  ;;  %v152_v26 = vmul.f32 %v3027_v22, %v3027_v22 }
  0xe1   :  { %v153_v27 = vsel %vm139_vm0, %v151_v25, 0.0  ;;  %v156_v28 = vsel %vm139_vm0, %v152_v26, 0.0 }
  0xe2   :  { %199 = vadd.xlane.f32.xlu0 %v198_v24  ;;  %154 = vadd.xlane.f32.xlu1 %v153_v27 }
  0xe6   :  { %157 = vadd.xlane.f32.xlu1 %v156_v28 }
 0x167   :  { %v197_v38 = vpop.xlane.xlu0 %196 }
 0x168   :  { %v201_v39 = vmul.f32 0.03125, %v197_v38 }
 0x16a   :  { %v203_v40 = vadd.f32 1e-05, %v201_v39  ;;  %v3100_v39 = vld [vmem:[#allocation12 + $0x8] sm:$0xff] }
 0x16b   :  { %v155_v41 = vpop.xlane.xlu1 %154  ;;  %v200_v42 = vpop.xlane.xlu0 %199 }
 0x16c   :  { %2713 = vrsqrt.f32 %v203_v40  ;;  %v159_v43 = vmul.f32 0.03125, %v155_v41  ;;  %v202_v44 = vmul.f32 0.03125, %v200_v42 }
 0x16e   :  { %v161_v45 = vadd.f32 1e-05, %v159_v43  ;;  %v204_v46 = vadd.f32 1e-05, %v202_v44  ;;  %v3104_v43 = vld [vmem:[#allocation12] sm:$0xff] }
 0x16f   :  { %v158_v47 = vpop.xlane.xlu1 %157 }
 0x170   :  { %2715 = vrsqrt.f32 %v161_v45  ;;  %v160_v48 = vmul.f32 0.03125, %v158_v47 }
 0x171   :  { %2717 = vrsqrt.f32 %v204_v46 }
 0x172   :  { %v162_v49 = vadd.f32 1e-05, %v160_v48 }
 0x174   :  { %2719 = vrsqrt.f32 %v162_v49 }
 0x179   :  { %v2714_v50 = vpop.eup %2713 }
 0x17a   :  { %v207_v52 = vmul.f32 %v2714_v50, %v3017_v13 }
 0x17c   :  { %v209_v54 = vmul.f32 %v2432_v51, %v207_v52 }
 0x17d   :  { %v2716_v55 = vpop.eup %2715 }
 0x17e   :  { %v2718_v56 = vpop.eup %2717  ;;  %v211_v57 = vadd.f32 %v2433_v53, %v209_v54  ;;  %v165_v58 = vmul.f32 %v2716_v55, %v149_v21 }
 0x17f   :  { %v208_v59 = vmul.f32 %v2718_v56, %v3019_v14 }
 0x180   :  { %2562 = vmatprep.mubr.msk.f32.mxu1 %vm139_vm0, %v211_v57  ;;  %v173_v60 = vmul.f32 %v2432_v51, %v165_v58 }
 0x181   :  { %v2720_v61 = vpop.eup %2719  ;;  %v210_v62 = vmul.f32 %v2432_v51, %v208_v59 }
 0x182   :  { %v181_v63 = vadd.f32 %v2433_v53, %v173_v60  ;;  %v166_v0 = vmul.f32 %v2720_v61, %v3027_v22 }
 0x183   :  { %v212_v1 = vadd.f32 %v2433_v53, %v210_v62 }
 0x184   :  { %2551 = vmatprep.mubr.msk.f32.mxu0 %vm139_vm0, %v181_v63  ;;  %v174_v2 = vmul.f32 %v2432_v51, %v166_v0 }
 0x185   :  { %2563 = vmatmul.mubr.msk.f32.vlgmr.msra.gmra.mxu1 %vm139_vm0, %v212_v1 }
 0x186   :  { %v182_v4 = vadd.f32 %v2433_v53, %v174_v2  ;;  %2578 = vmatprep.mubr.msk.f32.mxu1 %vm2912_vm1, %v2911_v9 }
 0x188   :  { %2552 = vmatmul.mubr.msk.f32.vlgmr.msra.gmra.mxu0 %vm139_vm0, %v182_v4 }
 0x189   :  { %2566 = vmatpush3.msra.mxu0 %v134_v37  ;;  %2573 = vmatprep.mubr.msk.f32.mxu0 %vm139_vm0, %v211_v57 }
 0x18a   :  { %2567 = vmatprep.subr.mxu0 %v133_v5 }
 0x18b   :  { %2568 = vmatpush3.msra.mxu0 %v133_v5  ;;  %v3139_v5 = vld [vmem:[#allocation12 + $0x10] sm:$0xff] }
 0x18c   :  { %2569 = vmatprep.subr.mxu0 %v132_v7 }
 0x18d   :  { %2570 = vmatpush3.msra.mxu0 %v132_v7 }
 0x18e   :  { %2571 = vmatprep.subr.mxu0 %v131_v8 }
 0x18f   :  { %2572 = vmatpush3.msra.mxu0 %v131_v8 }
 0x190   :  { %2574 = vmatmul.mubr.msk.f32.vlgmr.msra.gmra.mxu0 %vm139_vm0, %v212_v1  ;;  %2586 = vmatprep.subr.mxu0 %v2911_v9 }
 0x191   :  { %2588 = vmatprep.mubr.msk.f32.mxu0 %vm2912_vm1, %v2911_v9 }
 0x245   :  { %v3056_v10 = vpop.f32.mrf.mxu1 }
 0x247   :  { %v3058_v11 = vpop.f32.mrf.mxu1 }
 0x248   :  { %615 = vrot.lane.b32.xlu0 %v3058_v11, %s2913_s2  ;;  %2577 = vmatpush3.xpose.msk.msra.mxu1 %vm452_vm2, %v3058_v11  ;;  %v3064_v12 = vpop.f32.mrf.mxu0 }
 0x249   :  { %2581 = vmatprep.subr.mxu1 %v2911_v9 }
 0x24a   :  { %v285_v13 = vpop.f32.mrf.mxu0 }
 0x24b   :  { %v3067_v14 = vmul.f32 0.35355338, %v285_v13 }
 0x24d   :  { %613 = vrot.lane.b32.xlu1 %v3067_v14, %s2913_s2  ;;  %2579 = vmatmul.mubr.msk.f32.vlgmr.msra.gmra.mxu1 %vm452_vm2, %v3067_v14 }
 0x24e   :  { %2583 = vmatprep.mubr.msk.f32.mxu1 %vm2912_vm1, %v2911_v9 }
 0x250   :  { %v3075_v15 = vpop.f32.mrf.mxu0 }
 0x252   :  { %v3077_v16 = vpop.f32.mrf.mxu0 }
 0x253   :  { %2582 = vmatpush3.msra.mxu1 %v3077_v16 }
 0x254   :  { %2591 = vmatprep.subr.mxu1 %v2911_v9 }
 0x2ba   :  { %v616_v17 = vpop.permute.xlu0 %615 }
 0x2bb   :  { %2587 = vmatpush3.xpose.msk.msra.mxu0 %vm452_vm2, %v616_v17  ;;  %v3150_v17 = vmul.f32 0.35355338, %v3064_v12 }
 0x2bc   :  { %2596 = vmatprep.subr.mxu0 %v2911_v9 }
 0x2bf   :  { %v614_v18 = vpop.permute.xlu1 %613 }
 0x2c0   :  { %2589 = vmatmul.mubr.msk.f32.vlgmr.msra.gmra.mxu0 %vm452_vm2, %v614_v18 }
 0x2c1   :  { %2598 = vmatprep.mubr.msk.f32.mxu0 %vm2912_vm1, %v2911_v9  ;;  %2597 = vmatpush3.msra.mxu0 %v3100_v39 }
 0x2c2   :  { %2606 = vmatprep.subr.mxu0 %v2911_v9 }
 0x30d   :  { %v525_v19 = vpop.f32.mrf.mxu1 }
 0x30e   :  { %v529_v20 = vsel %vm452_vm2, %v525_v19, -inf }
 0x30f   :  { %530 = vmax.xlane.f32.xlu1 %v529_v20  ;;  %v2580_v21 = vpop.f32.mrf.mxu1 }
 0x380   :  { %v687_v22 = vpop.f32.mrf.mxu0 }
 0x381   :  { %v691_v23 = vsel %vm452_vm2, %v687_v22, -inf }
 0x382   :  { %692 = vmax.xlane.f32.xlu0 %v691_v23  ;;  %v2590_v24 = vpop.f32.mrf.mxu0 }
 0x398   :  { %v531_v25 = vpop.xlane.xlu1 %530 }
 0x399   :  { %v532_v26 = vsub.f32 %v525_v19, %v531_v25 }
 0x39b   :  { %v533_v27 = vmul.f32 1.442695, %v532_v26  ;;  %v3158_v26 = vld [vmem:[#allocation12 + $0x18] sm:$0xff] }
 0x39d   :  { %2721 = vpow2.f32 %v533_v27 }
 0x3aa   :  { %v2722_v28 = vpop.eup %2721 }
 0x3ab   :  { %v535_v29 = vsel %vm452_vm2, %v2722_v28, 0.0 }
 0x3ac   :  { %536 = vadd.xlane.f32.xlu0 %v535_v29 }
 0x3c2   :  { %703 = vrot.lane.b32.xlu0 %v3077_v16, %s2913_s2 }
 0x40b   :  { %v693_v30 = vpop.xlane.xlu0 %692 }
 0x40c   :  { %v694_v31 = vsub.f32 %v687_v22, %v693_v30 }
 0x40e   :  { %v695_v32 = vmul.f32 1.442695, %v694_v31 }
 0x410   :  { %2723 = vpow2.f32 %v695_v32 }
 0x41d   :  { %v2724_v33 = vpop.eup %2723 }
 0x41e   :  { %v697_v34 = vsel %vm452_vm2, %v2724_v33, 0.0 }
 0x41f   :  { %698 = vadd.xlane.f32.xlu1 %v697_v34 }
 0x430   :  { %927 = vrot.lane.b32.xlu1 %v3058_v11, %s2914_s3 }
 0x434   :  { %925 = vrot.lane.b32.xlu1 %v3067_v14, %s2914_s3 }
 0x435   :  { %v537_v35 = vpop.xlane.xlu0 %536 }
 0x436   :  { %2725 = vrcp.f32 %v537_v35 }
 0x439   :  { %v704_v38 = vpop.permute.xlu0 %703 }
 0x443   :  { %v2726_v36 = vpop.eup %2725 }
 0x444   :  { %v539_v37 = vmul.f32 %v2726_v36, %v2722_v28 }
 0x446   :  { %2584 = vmatmul.mubr.msk.f32.vlgmr.msra.gmra.mxu1 %vm452_vm2, %v539_v37 }
 0x447   :  { %2592 = vmatpush3.msra.mxu1 %v704_v38  ;;  %2593 = vmatprep.mubr.msk.f32.mxu1 %vm2912_vm1, %v2911_v9 }
 0x448   :  { %2601 = vmatprep.subr.mxu1 %v2911_v9 }
 0x4a8   :  { %v699_v40 = vpop.xlane.xlu1 %698 }
 0x4a9   :  { %2727 = vrcp.f32 %v699_v40 }
 0x4ac   :  { %v928_v46 = vpop.permute.xlu1 %927 }
 0x4b0   :  { %v926_v49 = vpop.permute.xlu1 %925 }
 0x4b6   :  { %v2728_v41 = vpop.eup %2727 }
 0x4b7   :  { %v701_v42 = vmul.f32 %v2728_v41, %v2724_v33 }
 0x4b9   :  { %2594 = vmatmul.mubr.msk.f32.vlgmr.msra.gmra.mxu1 %vm452_vm2, %v701_v42 }
 0x4ba   :  { %2602 = vmatpush3.msra.mxu1 %v3104_v43  ;;  %2603 = vmatprep.mubr.msk.f32.mxu1 %vm2912_vm1, %v2911_v9 }
 0x4bb   :  { %2611 = vmatprep.subr.mxu1 %v2911_v9 }
 0x506   :  { %v609_v44 = vpop.f32.mrf.mxu1 }
 0x507   :  { %2604 = vmatmul.mubr.msk.f32.vlgmr.msra.gmra.mxu1 %vm452_vm2, %v609_v44 }
 0x508   :  { %v2585_v45 = vpop.f32.mrf.mxu1  ;;  %2613 = vmatprep.mubr.msk.f32.mxu1 %vm2912_vm1, %v2911_v9 }
 0x579   :  { %v775_v47 = vpop.f32.mrf.mxu1 }
 0x57a   :  { %2599 = vmatmul.mubr.msk.f32.vlgmr.msra.gmra.mxu0 %vm452_vm2, %v775_v47 }
 0x57b   :  { %2607 = vmatpush3.xpose.msk.msra.mxu0 %vm452_vm2, %v928_v46  ;;  %v2595_v48 = vpop.f32.mrf.mxu1  ;;  %2608 = vmatprep.mubr.msk.f32.mxu0 %vm2912_vm1, %v2911_v9 }
 0x57c   :  { %2616 = vmatprep.subr.mxu0 %v2911_v9 }
 0x57e   :  { %2609 = vmatmul.mubr.msk.f32.vlgmr.msra.gmra.mxu0 %vm452_vm2, %v926_v49 }
 0x57f   :  { %2618 = vmatprep.mubr.msk.f32.mxu0 %vm2912_vm1, %v2911_v9  ;;  %2617 = vmatpush3.msra.mxu0 %v3139_v5 }
 0x580   :  { %2626 = vmatprep.subr.mxu0 %v2911_v9 }
 0x5c7   :  { %v921_v50 = vpop.f32.mrf.mxu1 }
 0x5c9   :  { %v2605_v51 = vpop.f32.mrf.mxu1 }
 0x63a   :  { %v848_v52 = vpop.f32.mrf.mxu0 }
 0x63b   :  { %v922_v12 = vadd.f32 %v921_v50, %v848_v52 }
 0x63c   :  { %v2600_v53 = vpop.f32.mrf.mxu0 }
 0x63e   :  { %v999_v54 = vpop.f32.mrf.mxu0 }
 0x63f   :  { %v1003_v55 = vsel %vm452_vm2, %v999_v54, -inf }
 0x640   :  { %1004 = vmax.xlane.f32.xlu1 %v1003_v55  ;;  %v2610_v56 = vpop.f32.mrf.mxu0 }
 0x651   :  { %1166 = vrot.lane.b32.xlu1 %v3058_v11, %s2915_s20 }
 0x655   :  { %1164 = vrot.lane.b32.xlu1 %v3067_v14, %s2915_s20 }
 0x6c9   :  { %v1005_v57 = vpop.xlane.xlu1 %1004 }
 0x6ca   :  { %v1006_v58 = vsub.f32 %v999_v54, %v1005_v57 }
 0x6cc   :  { %v1007_v59 = vmul.f32 1.442695, %v1006_v58 }
 0x6cd   :  { %v1167_v1 = vpop.permute.xlu1 %1166 }
 0x6ce   :  { %2729 = vpow2.f32 %v1007_v59 }
 0x6d1   :  { %v1165_v4 = vpop.permute.xlu1 %1164 }
 0x6db   :  { %v2730_v60 = vpop.eup %2729 }
 0x6dc   :  { %v1009_v61 = vsel %vm452_vm2, %v2730_v60, 0.0 }
 0x6dd   :  { %1010 = vadd.xlane.f32.xlu0 %v1009_v61 }
 0x6f3   :  { %1014 = vrot.lane.b32.xlu0 %v3077_v16, %s2914_s3 }
 0x766   :  { %v1011_v62 = vpop.xlane.xlu0 %1010 }
 0x767   :  { %2731 = vrcp.f32 %v1011_v62 }
 0x76a   :  { %v1015_v63 = vpop.permute.xlu0 %1014 }
 0x76b   :  { %2612 = vmatpush3.msra.mxu1 %v1015_v63 }
 0x76c   :  { %2621 = vmatprep.subr.mxu1 %v2911_v9 }
 0x774   :  { %v2732_v0 = vpop.eup %2731 }
 0x775   :  { %v1013_v2 = vmul.f32 %v2732_v0, %v2730_v60 }
 0x777   :  { %2614 = vmatmul.mubr.msk.f32.vlgmr.msra.gmra.mxu1 %vm452_vm2, %v1013_v2 }
 0x778   :  { %2622 = vmatpush3.xpose.msk.msra.mxu1 %vm452_vm2, %v1167_v1  ;;  %2623 = vmatprep.mubr.msk.f32.mxu1 %vm2912_vm1, %v2911_v9 }
 0x779   :  { %2631 = vmatprep.subr.mxu1 %v2911_v9 }
 0x77b   :  { %2624 = vmatmul.mubr.msk.f32.vlgmr.msra.gmra.mxu1 %vm452_vm2, %v1165_v4 }
 0x77c   :  { %2633 = vmatprep.mubr.msk.f32.mxu1 %vm2912_vm1, %v2911_v9  ;;  %2632 = vmatpush3.msra.mxu1 %v3158_v26 }
 0x77d   :  { %2641 = vmatprep.subr.mxu1 %v2911_v9 }
 0x837   :  { %v1086_v7 = vpop.f32.mrf.mxu1 }
 0x838   :  { %2619 = vmatmul.mubr.msk.f32.vlgmr.msra.gmra.mxu0 %vm452_vm2, %v1086_v7 }
 0x839   :  { %v2615_v8 = vpop.f32.mrf.mxu1  ;;  %2628 = vmatprep.mubr.msk.f32.mxu0 %vm2912_vm1, %v2911_v9 }
 0x83b   :  { %v1238_v11 = vpop.f32.mrf.mxu1 }
 0x83c   :  { %v1242_v13 = vsel %vm452_vm2, %v1238_v11, -inf }
 0x83d   :  { %1243 = vmax.xlane.f32.xlu0 %v1242_v13  ;;  %v2625_v14 = vpop.f32.mrf.mxu1 }
 0x853   :  { %1253 = vrot.lane.b32.xlu0 %v3077_v16, %s2915_s20 }
 0x857   :  { %1563 = vrot.lane.b32.xlu0 %v3150_v17, %s2913_s2 }
 0x8c6   :  { %v1244_v18 = vpop.xlane.xlu0 %1243 }
 0x8c7   :  { %v1245_v19 = vsub.f32 %v1238_v11, %v1244_v18 }
 0x8c9   :  { %v1246_v20 = vmul.f32 1.442695, %v1245_v19 }
 0x8ca   :  { %v1254_v21 = vpop.permute.xlu0 %1253 }
 0x8cb   :  { %2733 = vpow2.f32 %v1246_v20  ;;  %2627 = vmatpush3.msra.mxu0 %v1254_v21 }
 0x8cc   :  { %2636 = vmatprep.subr.mxu0 %v2911_v9 }
 0x8ce   :  { %v1564_v31 = vpop.permute.xlu0 %1563 }
 0x8d8   :  { %v2734_v22 = vpop.eup %2733 }
 0x8d9   :  { %v1248_v23 = vsel %vm452_vm2, %v2734_v22, 0.0 }
 0x8da   :  { %1249 = vadd.xlane.f32.xlu1 %v1248_v23 }
 0x8eb   :  { %1565 = vrot.lane.b32.xlu1 %v3056_v10, %s2913_s2 }
 0x8f8   :  { %v1159_v16 = vpop.f32.mrf.mxu0 }
 0x8f9   :  { %v1163_v24 = vadd.f32 %v1159_v16, %v922_v12 }
 0x8fa   :  { %v2620_v25 = vpop.f32.mrf.mxu0 }
 0x8fb   :  { %v2916_v25 = vmov 0  }
 0x8fc   :  { %2711 = vset.pattern.permute.xlu1 %v2916_v25  ;;  %2712 = vset.pattern.permute.xlu0 %v2916_v25 }
 0x963   :  { %v1250_v27 = vpop.xlane.xlu1 %1249 }
 0x964   :  { %2735 = vrcp.f32 %v1250_v27 }
 0x967   :  { %v1566_v30 = vpop.permute.xlu1 %1565 }
 0x971   :  { %v2736_v28 = vpop.eup %2735 }
 0x972   :  { %v1252_v29 = vmul.f32 %v2736_v28, %v2734_v22 }
 0x974   :  { %2629 = vmatmul.mubr.msk.f32.vlgmr.msra.gmra.mxu0 %vm452_vm2, %v1252_v29 }
 0x975   :  { %2637 = vmatpush3.xpose.msk.msra.mxu0 %vm452_vm2, %v3056_v10  ;;  %2638 = vmatprep.mubr.msk.f32.mxu0 %vm2912_vm1, %v2911_v9 }
 0x976   :  { %2646 = vmatprep.subr.mxu0 %v2911_v9 }
 0x978   :  { %2639 = vmatmul.mubr.msk.f32.vlgmr.msra.gmra.mxu0 %vm452_vm2, %v3150_v17 }
 0x979   :  { %2647 = vmatpush3.xpose.msk.msra.mxu0 %vm452_vm2, %v1566_v30  ;;  %2648 = vmatprep.mubr.msk.f32.mxu0 %vm2912_vm1, %v2911_v9 }
 0x97a   :  { %2656 = vmatprep.subr.mxu0 %v2911_v9 }
 0x97c   :  { %2649 = vmatmul.mubr.msk.f32.vlgmr.msra.gmra.mxu0 %vm452_vm2, %v1564_v31 }
 0x97d   :  { %2657 = vmatpush3.msra.mxu0 %v3100_v39  ;;  %2658 = vmatprep.mubr.msk.f32.mxu0 %vm2912_vm1, %v2911_v9 }
 0x97e   :  { %2666 = vmatprep.subr.mxu0 %v2911_v9 }
 0xa34   :  { %v1325_v32 = vpop.f32.mrf.mxu0 }
 0xa35   :  { %2634 = vmatmul.mubr.msk.f32.vlgmr.msra.gmra.mxu1 %vm452_vm2, %v1325_v32  ;;  %v2354_v32 = vlaneseq }
 0xa36   :  { %2642 = vmatpush3.msra.mxu1 %v3075_v15  ;;  %v2630_v33 = vpop.f32.mrf.mxu0  ;;  %2643 = vmatprep.mubr.msk.f32.mxu1 %vm2912_vm1, %v2911_v9 }
 0xa37   :  { %2651 = vmatprep.subr.mxu1 %v2911_v9  ;;  %v2472_v33 = vld [vmem:[#allocation2] ss:$0 sm:$0xff] }
 0xa38   :  { %v1475_v34 = vpop.f32.mrf.mxu0 }
 0xa39   :  { %v1479_v35 = vsel %vm452_vm2, %v1475_v34, -inf }
 0xa3a   :  { %1480 = vmax.xlane.f32.xlu1 %v1479_v35  ;;  %v2640_v36 = vpop.f32.mrf.mxu0  ;;  %v2358_v35 = vand.u32 127, %v2354_v32 }
 0xa3c   :  { %v1637_v37 = vpop.f32.mrf.mxu0 }
 0xa3d   :  { %v1641_v38 = vsel %vm452_vm2, %v1637_v37, -inf }
 0xa3e   :  { %1642 = vmax.xlane.f32.xlu0 %v1641_v38  ;;  %v2650_v39 = vpop.f32.mrf.mxu0 }
 0xa4b   :  { %1653 = vrot.lane.b32.xlu1 %v3075_v15, %s2913_s2 }
 0xa4f   :  { %1875 = vrot.lane.b32.xlu1 %v3150_v17, %s2914_s3 }
 0xac3   :  { %v1481_v40 = vpop.xlane.xlu1 %1480 }
 0xac4   :  { %v1482_v41 = vsub.f32 %v1475_v34, %v1481_v40 }
 0xac6   :  { %v1483_v42 = vmul.f32 1.442695, %v1482_v41 }
 0xac7   :  { %v1643_v44 = vpop.xlane.xlu0 %1642  ;;  %v1654_v58 = vpop.permute.xlu1 %1653 }
 0xac8   :  { %2737 = vpow2.f32 %v1483_v42  ;;  %v1644_v45 = vsub.f32 %v1637_v37, %v1643_v44 }
 0xaca   :  { %v1645_v46 = vmul.f32 1.442695, %v1644_v45 }
 0xacc   :  { %2739 = vpow2.f32 %v1645_v46 }
 0xad5   :  { %v2738_v47 = vpop.eup %2737 }
 0xad6   :  { %v1485_v48 = vsel %vm452_vm2, %v2738_v47, 0.0 }
 0xad7   :  { %1486 = vadd.xlane.f32.xlu0 %v1485_v48 }
 0xad9   :  { %v2740_v49 = vpop.eup %2739 }
 0xada   :  { %v1647_v50 = vsel %vm452_vm2, %v2740_v49, 0.0 }
 0xadb   :  { %1648 = vadd.xlane.f32.xlu0 %v1647_v50 }
 0xaf1   :  { %1877 = vrot.lane.b32.xlu0 %v3056_v10, %s2914_s3 }
 0xaf5   :  { %v1398_v51 = vpop.f32.mrf.mxu1 }
 0xaf6   :  { %v3194_v52 = vadd.f32 %v1398_v51, %v1163_v24 }
 0xaf7   :  { %v2635_v53 = vpop.f32.mrf.mxu1 }
 0xb60   :  { %v1487_v54 = vpop.xlane.xlu0 %1486 }
 0xb61   :  { %2741 = vrcp.f32 %v1487_v54 }
 0xb64   :  { %v1649_v55 = vpop.xlane.xlu0 %1648 }
 0xb65   :  { %2743 = vrcp.f32 %v1649_v55 }
 0xb68   :  { %v1878_v0 = vpop.permute.xlu0 %1877 }
 0xb6e   :  { %v2742_v56 = vpop.eup %2741 }
 0xb6f   :  { %v1489_v57 = vmul.f32 %v2742_v56, %v2738_v47 }
 0xb71   :  { %2644 = vmatmul.mubr.msk.f32.vlgmr.msra.gmra.mxu1 %vm452_vm2, %v1489_v57 }
 0xb72   :  { %v2744_v59 = vpop.eup %2743  ;;  %2652 = vmatpush3.msra.mxu1 %v1654_v58  ;;  %2653 = vmatprep.mubr.msk.f32.mxu1 %vm2912_vm1, %v2911_v9 }
 0xb73   :  { %v1651_v60 = vmul.f32 %v2744_v59, %v2740_v49  ;;  %2661 = vmatprep.subr.mxu1 %v2911_v9 }
 0xb75   :  { %2654 = vmatmul.mubr.msk.f32.vlgmr.msra.gmra.mxu1 %vm452_vm2, %v1651_v60 }
 0xb76   :  { %2662 = vmatpush3.msra.mxu1 %v3104_v43  ;;  %2663 = vmatprep.mubr.msk.f32.mxu1 %vm2912_vm1, %v2911_v9  ;;  %v1876_v43 = vpop.permute.xlu1 %1875 }
 0xb77   :  { %2671 = vmatprep.subr.mxu1 %v2911_v9 }
 0xc31   :  { %v1559_v61 = vpop.f32.mrf.mxu1 }
 0xc32   :  { %2664 = vmatmul.mubr.msk.f32.vlgmr.msra.gmra.mxu1 %vm452_vm2, %v1559_v61 }
 0xc33   :  { %v2645_v62 = vpop.f32.mrf.mxu1  ;;  %2673 = vmatprep.mubr.msk.f32.mxu1 %vm2912_vm1, %v2911_v9 }
 0xc34   :  { %v2404_v62 = vmul.f32 1.1111112, %v3194_v52 }
 0xc35   :  { %v1725_v63 = vpop.f32.mrf.mxu1 }
 0xc36   :  { %2659 = vmatmul.mubr.msk.f32.vlgmr.msra.gmra.mxu0 %vm452_vm2, %v1725_v63 }
 0xc37   :  { %2667 = vmatpush3.xpose.msk.msra.mxu0 %vm452_vm2, %v1878_v0  ;;  %v2655_v1 = vpop.f32.mrf.mxu1  ;;  %2668 = vmatprep.mubr.msk.f32.mxu0 %vm2912_vm1, %v2911_v9 }
 0xc38   :  { %2676 = vmatprep.subr.mxu0 %v2911_v9 }
 0xc3a   :  { %2669 = vmatmul.mubr.msk.f32.vlgmr.msra.gmra.mxu0 %vm452_vm2, %v1876_v43 }
 0xc3b   :  { %2677 = vmatpush3.msra.mxu0 %v3139_v5  ;;  %2678 = vmatprep.mubr.msk.f32.mxu0 %vm2912_vm1, %v2911_v9 }
 0xc3c   :  { %2686 = vmatprep.subr.mxu0 %v2911_v9 }
 0xcf2   :  { %v1871_v2 = vpop.f32.mrf.mxu1 }
 0xcf4   :  { %v2665_v4 = vpop.f32.mrf.mxu1 }
 0xcf6   :  { %v1798_v7 = vpop.f32.mrf.mxu0 }
 0xcf7   :  { %v3218_v8 = vadd.f32 %v1871_v2, %v1798_v7 }
 0xcf8   :  { %v2660_v11 = vpop.f32.mrf.mxu0 }
 0xcfa   :  { %v1949_v13 = vpop.f32.mrf.mxu0 }
 0xcfb   :  { %v1953_v14 = vsel %vm452_vm2, %v1949_v13, -inf }
 0xcfc   :  { %1954 = vmax.xlane.f32.xlu1 %v1953_v14  ;;  %v2670_v18 = vpop.f32.mrf.mxu0 }
 0xd0d   :  { %2116 = vrot.lane.b32.xlu1 %v3056_v10, %s2915_s20 }
 0xd11   :  { %2114 = vrot.lane.b32.xlu1 %v3150_v17, %s2915_s20 }
 0xd85   :  { %v1955_v5 = vpop.xlane.xlu1 %1954 }
 0xd86   :  { %v1956_v19 = vsub.f32 %v1949_v13, %v1955_v5 }
 0xd88   :  { %v1957_v20 = vmul.f32 1.442695, %v1956_v19 }
 0xd89   :  { %v2117_v16 = vpop.permute.xlu1 %2116 }
 0xd8a   :  { %2745 = vpow2.f32 %v1957_v20 }
 0xd8d   :  { %v2115_v24 = vpop.permute.xlu1 %2114 }
 0xd97   :  { %v2746_v21 = vpop.eup %2745 }
 0xd98   :  { %v1959_v22 = vsel %vm452_vm2, %v2746_v21, 0.0 }
 0xd99   :  { %1960 = vadd.xlane.f32.xlu0 %v1959_v22 }
 0xdaf   :  { %1964 = vrot.lane.b32.xlu0 %v3075_v15, %s2914_s3 }
 0xe22   :  { %v1961_v23 = vpop.xlane.xlu0 %1960 }
 0xe23   :  { %2747 = vrcp.f32 %v1961_v23 }
 0xe26   :  { %v1965_v12 = vpop.permute.xlu0 %1964 }
 0xe27   :  { %2672 = vmatpush3.msra.mxu1 %v1965_v12 }
 0xe28   :  { %2681 = vmatprep.subr.mxu1 %v2911_v9 }
 0xe30   :  { %v2748_v10 = vpop.eup %2747 }
 0xe31   :  { %v1963_v17 = vmul.f32 %v2748_v10, %v2746_v21 }
 0xe33   :  { %2674 = vmatmul.mubr.msk.f32.vlgmr.msra.gmra.mxu1 %vm452_vm2, %v1963_v17 }
 0xe34   :  { %2682 = vmatpush3.xpose.msk.msra.mxu1 %vm452_vm2, %v2117_v16  ;;  %2683 = vmatprep.mubr.msk.f32.mxu1 %vm2912_vm1, %v2911_v9 }
 0xe35   :  { %2691 = vmatprep.subr.mxu1 %v2911_v9 }
 0xe37   :  { %2684 = vmatmul.mubr.msk.f32.vlgmr.msra.gmra.mxu1 %vm452_vm2, %v2115_v24 }
 0xe38   :  { %2692 = vmatpush3.msra.mxu1 %v3158_v26  ;;  %2693 = vmatprep.mubr.msk.f32.mxu1 %vm2912_vm1, %v2911_v9  ;;  %v2355_v26 = vshrl.u32 %v2354_v32, 7 }
 0xe3a   :  { %v2356_v34 = vadd.s32 8, %v2355_v26  ;;  %v2359_v38 = vshll.u32 %v2355_v26, 16 }
 0xe3c   :  { %v2360_v36 = vshll.u32 %v2356_v34, 16  ;;  %v2361_v41 = vadd.s32 %v2359_v38, %v2358_v35 }
 0xe3e   :  { %v2362_v37 = vadd.s32 %v2360_v36, %v2358_v35 }
 0xef3   :  { %v2036_v27 = vpop.f32.mrf.mxu1 }
 0xef4   :  { %2679 = vmatmul.mubr.msk.f32.vlgmr.msra.gmra.mxu0 %vm452_vm2, %v2036_v27 }
 0xef5   :  { %v2675_v28 = vpop.f32.mrf.mxu1  ;;  %2688 = vmatprep.mubr.msk.f32.mxu0 %vm2912_vm1, %v2911_v9 }
 0xef7   :  { %v2188_v29 = vpop.f32.mrf.mxu1 }
 0xef8   :  { %v2192_v30 = vsel %vm452_vm2, %v2188_v29, -inf }
 0xef9   :  { %2193 = vmax.xlane.f32.xlu1 %v2192_v30  ;;  %v2685_v31 = vpop.f32.mrf.mxu1 }
 0xf0a   :  { %2368 = vperm.xlu1 %2711, %v2472_v33  }
 0xf82   :  { %v2194_v39 = vpop.xlane.xlu1 %2193 }
 0xf83   :  { %v2195_v40 = vsub.f32 %v2188_v29, %v2194_v39 }
 0xf85   :  { %v2196_v42 = vmul.f32 1.442695, %v2195_v40 }
 0xf86   :  { %v2369_v44 = vpop.permute.xlu1 %2368 }
 0xf87   :  { %2749 = vpow2.f32 %v2196_v42  ;;  %v2370_v9 = vadd.s32 %v2369_v44, %v2361_v41  ;;  %v2371_v45 = vadd.s32 %v2369_v44, %v2362_v37 }
 0xf89   :  { %v2372_v46 = vshll.u32 %v2370_v9, 13  ;;  %v2373_v14 = vshll.u32 %v2371_v45, 13 }
 0xf8b   :  { %v2374_v47 = vxor.u32 %v2372_v46, %v2370_v9  ;;  %v2375_v18 = vxor.u32 %v2373_v14, %v2371_v45 }
 0xf8d   :  { %v2473_v48 = vshrl.u32 %v2374_v47, 17  ;;  %v2474_v5 = vshrl.u32 %v2375_v18, 17 }
 0xf8f   :  { %v2380_v49 = vxor.u32 %v2473_v48, %v2374_v47 }
 0xf91   :  { %v2382_v50 = vshll.u32 %v2380_v49, 5 }
 0xf93   :  { %v2384_v51 = vxor.u32 %v2382_v50, %v2380_v49 }
 0xf94   :  { %v2750_v53 = vpop.eup %2749 }
 0xf95   :  { %v2386_v54 = vadd.s32 2654435769, %v2384_v51  ;;  %v2198_v55 = vsel %vm452_vm2, %v2750_v53, 0.0 }
 0xf96   :  { %2199 = vadd.xlane.f32.xlu0 %v2198_v55 }
 0xf97   :  { %v2388_v56 = vshll.u32 %v2386_v54, 9 }
 0xf99   :  { %v2390_v57 = vxor.u32 %v2388_v56, %v2386_v54 }
 0xf9b   :  { %v2475_v58 = vshrl.u32 %v2390_v57, 11 }
 0xf9d   :  { %v2396_v59 = vxor.u32 %v2475_v58, %v2390_v57 }
 0xf9f   :  { %v2398_v60 = vshll.u32 %v2396_v59, 7 }
 0xfa1   :  { %v2400_v61 = vxor.u32 %v2398_v60, %v2396_v59 }
 0xfa3   :  { %vm2402_vm3 = vcmp.ge.s32.totalorder %v2400_v61, 2576980378 }
 0xfa4   :  { %v2406_v63 = vsel %vm2402_vm3, %v2404_v62, 0.0 }
 0xfa5   :  { %v2408_v0 = vadd.f32 %v2406_v63, %v3007_v3 }
 0xfa7   :  { %2410 = vst.msk [vmem:[#allocation14] sm:$0xff] %vm139_vm0, %v2408_v0 }
 0xfac   :  { %2203 = vrot.lane.b32.xlu0 %v3075_v15, %s2915_s20  ;;  %v2381_v15 = vxor.u32 %v2474_v5, %v2375_v18 }
 0xfae   :  { %v2383_v19 = vshll.u32 %v2381_v15, 5 }
 0xfb0   :  { %v2385_v20 = vxor.u32 %v2383_v19, %v2381_v15 }
 0xfb4   :  { %v2109_v1 = vpop.f32.mrf.mxu0 }
 0xfb5   :  { %v2113_v43 = vadd.f32 %v2109_v1, %v3218_v8  ;;  %v2387_v8 = vadd.s32 2654435769, %v2385_v20 }
 0xfb6   :  { %v2680_v2 = vpop.f32.mrf.mxu0 }
 0xfb7   :  { %v2389_v21 = vshll.u32 %v2387_v8, 9 }
 0xfb9   :  { %v2391_v22 = vxor.u32 %v2389_v21, %v2387_v8 }
 0xfbb   :  { %v2476_v23 = vshrl.u32 %v2391_v22, 11 }
 0xfbd   :  { %v2397_v12 = vxor.u32 %v2476_v23, %v2391_v22 }
 0xfbf   :  { %v2399_v10 = vshll.u32 %v2397_v12, 7 }
 0xfc1   :  { %v2401_v17 = vxor.u32 %v2399_v10, %v2397_v12 }
 0xfc3   :  { %vm2403_vm4 = vcmp.ge.s32.totalorder %v2401_v17, 2576980378 }
0x101f   :  { %v2200_v4 = vpop.xlane.xlu0 %2199 }
0x1020   :  { %2751 = vrcp.f32 %v2200_v4 }
0x1023   :  { %v2204_v7 = vpop.permute.xlu0 %2203 }
0x1024   :  { %2687 = vmatpush3.msra.mxu0 %v2204_v7 }
0x102d   :  { %v2752_v11 = vpop.eup %2751 }
0x102e   :  { %v2202_v13 = vmul.f32 %v2752_v11, %v2750_v53 }
0x1030   :  { %2689 = vmatmul.mubr.msk.f32.vlgmr.msra.gmra.mxu0 %vm452_vm2, %v2202_v13 }
0x10f0   :  { %v2275_v52 = vpop.f32.mrf.mxu0 }
0x10f1   :  { %2694 = vmatmul.mubr.msk.f32.vlgmr.msra.gmra.mxu1 %vm452_vm2, %v2275_v52 }
0x10f2   :  { %v2690_v3 = vpop.f32.mrf.mxu0 }
0x11b1   :  { %v2348_v16 = vpop.f32.mrf.mxu1 }
0x11b2   :  { %v2352_v24 = vadd.f32 %v2348_v16, %v2113_v43 }
0x11b3   :  { %v2695_v25 = vpop.f32.mrf.mxu1 }
0x11b4   :  { %v2405_v27 = vmul.f32 1.1111112, %v2352_v24 }
0x11b6   :  { %v2407_v28 = vsel %vm2403_vm4, %v2405_v27, 0.0 }
0x11b7   :  { %v2409_v29 = vadd.f32 %v2407_v28, %v3011_v6 }
0x11b9   :  { %2411 = vst.msk [vmem:[#allocation14 + $0x8] sm:$0xff] %vm139_vm0, %v2409_v29 }
0x11ba   :  { %2884 = shalt.err (!%p2881_p6)
}
0x11bb   :  { %2423 = dma.vmem_to_hbm [thread:$0]  %s2418_s22, 256, %s3268_s9, [#allocation5], %s2905_s8, %s2905_s8, %s2906_s16  }
0x11bc   :  { %2901 = dma.done.wait [#allocation5], 256  }
0x11bd   :  { %2902 = vsyncadd [#allocation5], 4294967040 }
0x11be   :  { %2427 = vsyncpa [#allocation4], 1 }
0x11bf   :  { %2428 = vsyncpa [#allocation7], 1 }
0x11c0   :  { %2429 = vsyncpa [#allocation10], 1 }
0x11c1   :  { %2430 = vsyncpa [#allocation13], 1 }
0x11c2   :  { %2431 = vsyncpa [#allocation5], 1 }

</bundles_post_ra>
